<compile_context>
chip_gen: v7x
topology: tpu7x:2x2x1
jax: 0.10.0
libtpu: 0.0.40
codegen_flags: <defaults>
</compile_context>

<pallas_src>
import functools

import jax
import jax.numpy as jnp
from jax import lax
from jax.experimental import pallas as pl
from jax.experimental.pallas import tpu as pltpu

LANE = 128    # pad out-channel (MXU N) dims to this -> lane-dense output stores
CHUNK = 128   # flattened-pixel rows per matmul M-tile (128x128 f32 acc = 16 vregs)


def _round_up(x, m):
    return (x + m - 1) // m * m


def _block_kernel(x_ref, w1_ref, b1_ref, w2_ref, b2_ref, o_ref, h1_ref, *,
                  img_w, chunk):
    """One image: conv3x3 -> relu -> conv3x3 on flattened rows p = h*img_w + w.

    x_ref : (Mx, 3*Cin)  bf16  kw-folded input: channels = [x[p], x[p+1], x[p+2]]
    w1_ref: (3, 3*Cin, C) bf16 conv1 weights, one K = 3*Cin slab per kh
    b1_ref: (1, C) f32
    w2_ref: (9, Cmid, C) bf16  conv2 taps (kh*3+kw) with the real (unpadded) K
    b2_ref: (1, C) f32
    o_ref : (Mo, C) f32        conv2 output in flat coords (wrapper crops garbage)
    h1_ref: (Mh, Cmid) f32     VMEM scratch: relu(conv1), real channels only
    """
    Mo = o_ref.shape[0]
    Mh = h1_ref.shape[0]
    Cmid = h1_ref.shape[1]

    # ---- conv1 + ReLU: kw folded into K, so only 3 dots per chunk and every
    # LHS row offset (base + kh*img_w) is sublane aligned when img_w % 8 == 0.
    for base in range(0, Mh, chunk):
        acc = jnp.dot(x_ref[base:base + chunk, :], w1_ref[0],
                      preferred_element_type=jnp.float32)
        for kh in (1, 2):
            off = base + kh * img_w
            acc = acc + jnp.dot(x_ref[off:off + chunk, :], w1_ref[kh],
                                preferred_element_type=jnp.float32)
        acc = jnp.maximum(acc + b1_ref[...], 0.0)      # bias added at store time
        h1_ref[base:base + chunk, :] = acc[:, :Cmid]   # store real channels only

    # ---- conv2: 9 taps with the real K = Cmid (no zero padding of the
    # contraction); f32 scratch reads are cast to bf16 right at the MXU operand.
    for base in range(0, Mo, chunk):
        acc = None
        for t in range(9):
            kh, kw = divmod(t, 3)
            off = base + kh * img_w + kw
            lhs = h1_ref[off:off + chunk, :].astype(jnp.bfloat16)
            d = jnp.dot(lhs, w2_ref[t], preferred_element_type=jnp.float32)
            acc = d if acc is None else acc + d
        o_ref[base:base + chunk, :] = (acc + b2_ref[...]).astype(o_ref.dtype)


def block_forward(x_nchw, w1_oihw, b1, w2_oihw, b2):
    """Forward pass of Block. x_nchw: (N, Cin, H, W). Returns (N, Cout, H-4, W-4)."""
    N, Cin, H, W = x_nchw.shape
    Cmid = w1_oihw.shape[0]
    Cout = w2_oihw.shape[0]
    H2, W2 = H - 4, W - 4
    assert H2 >= 1 and W2 >= 1, "input too small for two valid 3x3 convs"

    C = LANE
    m_out = _round_up(H * W, CHUNK)                 # conv2 output rows per image (flat)
    m_h1 = m_out + _round_up(2 * W + 2, CHUNK)      # conv1 rows so conv2 reads stay in range
    m_x = m_h1 + _round_up(2 * W, 16)               # input rows so conv1 reads stay in range

    # ---- layout plumbing only: NCHW -> flat NHWC rows, kw-fold, pad, bf16 ----
    x_flat = jnp.transpose(x_nchw, (0, 2, 3, 1)).reshape(N, H * W, Cin)
    x_flat = jnp.pad(x_flat.astype(jnp.float32),
                     ((0, 0), (0, m_x + 2 - H * W), (0, 0)))        # zero halo rows
    x_cat = jnp.concatenate([x_flat[:, 0:m_x],
                             x_flat[:, 1:m_x + 1],
                             x_flat[:, 2:m_x + 2]], axis=-1)        # (N, m_x, 3*Cin)
    x_cat = x_cat.astype(jnp.bfloat16)

    w1 = jnp.transpose(w1_oihw, (2, 3, 1, 0)).reshape(3, 3 * Cin, Cmid)   # (kh, kw*Cin+i, o)
    w1 = jnp.pad(w1.astype(jnp.float32), ((0, 0), (0, 0), (0, C - Cmid))).astype(jnp.bfloat16)
    w2 = jnp.transpose(w2_oihw, (2, 3, 1, 0)).reshape(9, Cmid, Cout)      # (kh*3+kw, i, o)
    w2 = jnp.pad(w2.astype(jnp.float32), ((0, 0), (0, 0), (0, C - Cout))).astype(jnp.bfloat16)
    b1p = jnp.pad(b1.reshape(1, Cmid).astype(jnp.float32), ((0, 0), (0, C - Cmid)))
    b2p = jnp.pad(b2.reshape(1, Cout).astype(jnp.float32), ((0, 0), (0, C - Cout)))

    kernel = functools.partial(_block_kernel, img_w=W, chunk=CHUNK)

    out_flat = pl.pallas_call(
        kernel,
        out_shape=jax.ShapeDtypeStruct((N, m_out, C), jnp.float32),
        grid_spec=pltpu.PrefetchScalarGridSpec(
            num_scalar_prefetch=0,
            grid=(N,),   # one image per grid step: megacore-parallel, pipelined DMA
            in_specs=[
                pl.BlockSpec((None, m_x, 3 * Cin), lambda n: (n, 0, 0)),
                pl.BlockSpec((3, 3 * Cin, C), lambda n: (0, 0, 0)),
                pl.BlockSpec((1, C), lambda n: (0, 0)),
                pl.BlockSpec((9, Cmid, C), lambda n: (0, 0, 0)),
                pl.BlockSpec((1, C), lambda n: (0, 0)),
            ],
            out_specs=pl.BlockSpec((None, m_out, C), lambda n: (n, 0, 0)),
            scratch_shapes=[pltpu.VMEM((m_h1, Cmid), jnp.float32)],
        ),
        compiler_params=pltpu.CompilerParams(
            dimension_semantics=("parallel",),
        ),
    )(x_cat, w1, b1p, w2, b2p)

    # Crop garbage rows / padded channels and restore NCHW.
    out = out_flat[:, :H * W, :Cout].reshape(N, H, W, Cout)
    out = out[:, :H2, :W2, :]
    return jnp.transpose(out, (0, 3, 1, 2))


if __name__ == "__main__":
    # Block(inChannels=4, outChannels=8), input (N=2, C=4, H=16, W=16)
    key = jax.random.PRNGKey(0)
    k1, k2, k3, k4, k5 = jax.random.split(key, 5)
    N, Cin, H, W = 2, 4, 16, 16
    Cout = 8  # conv1: Cin->Cout, conv2: Cout->Cout (as in the PyTorch module)

    x = jax.random.normal(k1, (N, Cin, H, W), jnp.float32)
    w1 = jax.random.normal(k2, (Cout, Cin, 3, 3), jnp.float32) * 0.1   # OIHW
    b1 = jax.random.normal(k3, (Cout,), jnp.float32) * 0.1
    w2 = jax.random.normal(k4, (Cout, Cout, 3, 3), jnp.float32) * 0.1  # OIHW
    b2 = jax.random.normal(k5, (Cout,), jnp.float32) * 0.1

    out = block_forward(x, w1, b1, w2, b2)
    jax.block_until_ready(out)

    # Reference (plain XLA conv) with matching bf16 operand rounding; the kernel
    # accumulates in f32, so agreement is tight.
    rd = lambda a: a.astype(jnp.bfloat16).astype(jnp.float32)
    dn = ('NCHW', 'OIHW', 'NCHW')
    y1 = lax.conv_general_dilated(rd(x), rd(w1), (1, 1), 'VALID', dimension_numbers=dn)
    y1 = rd(jnp.maximum(y1 + b1[None, :, None, None], 0.0))
    y2 = lax.conv_general_dilated(y1, rd(w2), (1, 1), 'VALID', dimension_numbers=dn)
    y2 = y2 + b2[None, :, None, None]

    assert out.shape == (N, Cout, H - 4, W - 4), out.shape
    assert jnp.allclose(out, y2, atol=5e-3, rtol=5e-3), \
        float(jnp.max(jnp.abs(out - y2)))
    print("KERNEL_OK")
</pallas_src>

<mosaic_0001>
module attributes {stable_mosaic.version = 11 : i64} {
  func.func @_block_kernel(%arg0: i32, %arg1: memref<1x416x12xbf16, #tpu.memory_space<vmem>>, %arg2: memref<3x12x128xbf16, #tpu.memory_space<vmem>>, %arg3: memref<1x128xf32, #tpu.memory_space<vmem>>, %arg4: memref<9x8x128xbf16, #tpu.memory_space<vmem>>, %arg5: memref<1x128xf32, #tpu.memory_space<vmem>>, %arg6: memref<1x256x128xf32, #tpu.memory_space<vmem>>, %arg7: memref<384x8xf32, #tpu.memory_space<vmem>>) attributes {dimension_semantics = [#tpu.dimension_semantics<parallel>], iteration_bounds = array<i64: 2>, scalar_prefetch = 0 : i64, scratch_operands = 1 : i64, tpu.core_type = #tpu.core_type<tc>, window_params = [{transform_indices = @transform_0, window_bounds = array<i64: 1, 416, 12>}, {pipeline_mode = #tpu.pipeline_mode<synchronous>, transform_indices = @transform_1, window_bounds = array<i64: 3, 12, 128>}, {pipeline_mode = #tpu.pipeline_mode<synchronous>, transform_indices = @transform_2, window_bounds = array<i64: 1, 128>}, {pipeline_mode = #tpu.pipeline_mode<synchronous>, transform_indices = @transform_3, window_bounds = array<i64: 9, 8, 128>}, {pipeline_mode = #tpu.pipeline_mode<synchronous>, transform_indices = @transform_4, window_bounds = array<i64: 1, 128>}, {transform_indices = @transform_5, window_bounds = array<i64: 1, 256, 128>}]} {
    %c0 = arith.constant 0 : index
    %c0_0 = arith.constant 0 : index
    %c0_1 = arith.constant 0 : index
    %0 = vector.load %arg1[%c0, %c0_0, %c0_1] : memref<1x416x12xbf16, #tpu.memory_space<vmem>>, vector<1x128x12xbf16>
    %1 = vector.shape_cast %0 : vector<1x128x12xbf16> to vector<128x12xbf16>
    %c0_2 = arith.constant 0 : index
    %c0_3 = arith.constant 0 : index
    %c0_4 = arith.constant 0 : index
    %2 = vector.load %arg2[%c0_2, %c0_3, %c0_4] : memref<3x12x128xbf16, #tpu.memory_space<vmem>>, vector<1x12x128xbf16>
    %3 = vector.shape_cast %2 : vector<1x12x128xbf16> to vector<12x128xbf16>
    %cst = arith.constant dense<0.000000e+00> : vector<128x128xf32>
    %4 = tpu.matmul %1, %3, %cst {dimension_numbers = #tpu.dot_dimension_numbers<[1], [0], [0], [1], [0, 0, 1, 1], [], []>} : vector<128x12xbf16>, vector<12x128xbf16>, vector<128x128xf32> -> vector<128x128xf32>
    %c0_5 = arith.constant 0 : index
    %c16 = arith.constant 16 : index
    %c0_6 = arith.constant 0 : index
    %5 = vector.load %arg1[%c0_5, %c16, %c0_6] : memref<1x416x12xbf16, #tpu.memory_space<vmem>>, vector<1x128x12xbf16>
    %6 = vector.shape_cast %5 : vector<1x128x12xbf16> to vector<128x12xbf16>
    %c1 = arith.constant 1 : index
    %c0_7 = arith.constant 0 : index
    %c0_8 = arith.constant 0 : index
    %7 = vector.load %arg2[%c1, %c0_7, %c0_8] : memref<3x12x128xbf16, #tpu.memory_space<vmem>>, vector<1x12x128xbf16>
    %8 = vector.shape_cast %7 : vector<1x12x128xbf16> to vector<12x128xbf16>
    %cst_9 = arith.constant dense<0.000000e+00> : vector<128x128xf32>
    %9 = tpu.matmul %6, %8, %cst_9 {dimension_numbers = #tpu.dot_dimension_numbers<[1], [0], [0], [1], [0, 0, 1, 1], [], []>} : vector<128x12xbf16>, vector<12x128xbf16>, vector<128x128xf32> -> vector<128x128xf32>
    %10 = arith.addf %4, %9 : vector<128x128xf32>
    %c0_10 = arith.constant 0 : index
    %c32 = arith.constant 32 : index
    %c0_11 = arith.constant 0 : index
    %11 = vector.load %arg1[%c0_10, %c32, %c0_11] : memref<1x416x12xbf16, #tpu.memory_space<vmem>>, vector<1x128x12xbf16>
    %12 = vector.shape_cast %11 : vector<1x128x12xbf16> to vector<128x12xbf16>
    %c2 = arith.constant 2 : index
    %c0_12 = arith.constant 0 : index
    %c0_13 = arith.constant 0 : index
    %13 = vector.load %arg2[%c2, %c0_12, %c0_13] : memref<3x12x128xbf16, #tpu.memory_space<vmem>>, vector<1x12x128xbf16>
    %14 = vector.shape_cast %13 : vector<1x12x128xbf16> to vector<12x128xbf16>
    %cst_14 = arith.constant dense<0.000000e+00> : vector<128x128xf32>
    %15 = tpu.matmul %12, %14, %cst_14 {dimension_numbers = #tpu.dot_dimension_numbers<[1], [0], [0], [1], [0, 0, 1, 1], [], []>} : vector<128x12xbf16>, vector<12x128xbf16>, vector<128x128xf32> -> vector<128x128xf32>
    %16 = arith.addf %10, %15 : vector<128x128xf32>
    %c0_15 = arith.constant 0 : index
    %c0_16 = arith.constant 0 : index
    %17 = vector.load %arg3[%c0_15, %c0_16] : memref<1x128xf32, #tpu.memory_space<vmem>>, vector<1x128xf32>
    %18 = vector.broadcast %17 : vector<1x128xf32> to vector<128x128xf32>
    %19 = arith.addf %16, %18 : vector<128x128xf32>
    %cst_17 = arith.constant 0.000000e+00 : f32
    %20 = vector.broadcast %cst_17 : f32 to vector<128x128xf32>
    %21 = arith.maximumf %19, %20 : vector<128x128xf32>
    %22 = vector.extract_strided_slice %21 {offsets = [0, 0], sizes = [128, 8], strides = [1, 1]} : vector<128x128xf32> to vector<128x8xf32>
    %c0_18 = arith.constant 0 : index
    %c0_19 = arith.constant 0 : index
    %23 = vector.load %arg7[%c0_18, %c0_19] : memref<384x8xf32, #tpu.memory_space<vmem>>, vector<128x8xf32>
    tpu.vector_store %arg7[%c0_18, %c0_19], %22 {strides = array<i32>} : memref<384x8xf32, #tpu.memory_space<vmem>>, vector<128x8xf32>,
    %c0_20 = arith.constant 0 : index
    %c128 = arith.constant 128 : index
    %c0_21 = arith.constant 0 : index
    %24 = vector.load %arg1[%c0_20, %c128, %c0_21] : memref<1x416x12xbf16, #tpu.memory_space<vmem>>, vector<1x128x12xbf16>
    %25 = vector.shape_cast %24 : vector<1x128x12xbf16> to vector<128x12xbf16>
    %c0_22 = arith.constant 0 : index
    %c0_23 = arith.constant 0 : index
    %c0_24 = arith.constant 0 : index
    %26 = vector.load %arg2[%c0_22, %c0_23, %c0_24] : memref<3x12x128xbf16, #tpu.memory_space<vmem>>, vector<1x12x128xbf16>
    %27 = vector.shape_cast %26 : vector<1x12x128xbf16> to vector<12x128xbf16>
    %cst_25 = arith.constant dense<0.000000e+00> : vector<128x128xf32>
    %28 = tpu.matmul %25, %27, %cst_25 {dimension_numbers = #tpu.dot_dimension_numbers<[1], [0], [0], [1], [0, 0, 1, 1], [], []>} : vector<128x12xbf16>, vector<12x128xbf16>, vector<128x128xf32> -> vector<128x128xf32>
    %c0_26 = arith.constant 0 : index
    %c144 = arith.constant 144 : index
    %c0_27 = arith.constant 0 : index
    %29 = vector.load %arg1[%c0_26, %c144, %c0_27] : memref<1x416x12xbf16, #tpu.memory_space<vmem>>, vector<1x128x12xbf16>
    %30 = vector.shape_cast %29 : vector<1x128x12xbf16> to vector<128x12xbf16>
    %c1_28 = arith.constant 1 : index
    %c0_29 = arith.constant 0 : index
    %c0_30 = arith.constant 0 : index
    %31 = vector.load %arg2[%c1_28, %c0_29, %c0_30] : memref<3x12x128xbf16, #tpu.memory_space<vmem>>, vector<1x12x128xbf16>
    %32 = vector.shape_cast %31 : vector<1x12x128xbf16> to vector<12x128xbf16>
    %cst_31 = arith.constant dense<0.000000e+00> : vector<128x128xf32>
    %33 = tpu.matmul %30, %32, %cst_31 {dimension_numbers = #tpu.dot_dimension_numbers<[1], [0], [0], [1], [0, 0, 1, 1], [], []>} : vector<128x12xbf16>, vector<12x128xbf16>, vector<128x128xf32> -> vector<128x128xf32>
    %34 = arith.addf %28, %33 : vector<128x128xf32>
    %c0_32 = arith.constant 0 : index
    %c160 = arith.constant 160 : index
    %c0_33 = arith.constant 0 : index
    %35 = vector.load %arg1[%c0_32, %c160, %c0_33] : memref<1x416x12xbf16, #tpu.memory_space<vmem>>, vector<1x128x12xbf16>
    %36 = vector.shape_cast %35 : vector<1x128x12xbf16> to vector<128x12xbf16>
    %c2_34 = arith.constant 2 : index
    %c0_35 = arith.constant 0 : index
    %c0_36 = arith.constant 0 : index
    %37 = vector.load %arg2[%c2_34, %c0_35, %c0_36] : memref<3x12x128xbf16, #tpu.memory_space<vmem>>, vector<1x12x128xbf16>
    %38 = vector.shape_cast %37 : vector<1x12x128xbf16> to vector<12x128xbf16>
    %cst_37 = arith.constant dense<0.000000e+00> : vector<128x128xf32>
    %39 = tpu.matmul %36, %38, %cst_37 {dimension_numbers = #tpu.dot_dimension_numbers<[1], [0], [0], [1], [0, 0, 1, 1], [], []>} : vector<128x12xbf16>, vector<12x128xbf16>, vector<128x128xf32> -> vector<128x128xf32>
    %40 = arith.addf %34, %39 : vector<128x128xf32>
    %c0_38 = arith.constant 0 : index
    %c0_39 = arith.constant 0 : index
    %41 = vector.load %arg3[%c0_38, %c0_39] : memref<1x128xf32, #tpu.memory_space<vmem>>, vector<1x128xf32>
    %42 = vector.broadcast %41 : vector<1x128xf32> to vector<128x128xf32>
    %43 = arith.addf %40, %42 : vector<128x128xf32>
    %cst_40 = arith.constant 0.000000e+00 : f32
    %44 = vector.broadcast %cst_40 : f32 to vector<128x128xf32>
    %45 = arith.maximumf %43, %44 : vector<128x128xf32>
    %46 = vector.extract_strided_slice %45 {offsets = [0, 0], sizes = [128, 8], strides = [1, 1]} : vector<128x128xf32> to vector<128x8xf32>
    %c128_41 = arith.constant 128 : index
    %c0_42 = arith.constant 0 : index
    %47 = vector.load %arg7[%c128_41, %c0_42] : memref<384x8xf32, #tpu.memory_space<vmem>>, vector<128x8xf32>
    tpu.vector_store %arg7[%c128_41, %c0_42], %46 {strides = array<i32>} : memref<384x8xf32, #tpu.memory_space<vmem>>, vector<128x8xf32>,
    %c0_43 = arith.constant 0 : index
    %c256 = arith.constant 256 : index
    %c0_44 = arith.constant 0 : index
    %48 = vector.load %arg1[%c0_43, %c256, %c0_44] : memref<1x416x12xbf16, #tpu.memory_space<vmem>>, vector<1x128x12xbf16>
    %49 = vector.shape_cast %48 : vector<1x128x12xbf16> to vector<128x12xbf16>
    %c0_45 = arith.constant 0 : index
    %c0_46 = arith.constant 0 : index
    %c0_47 = arith.constant 0 : index
    %50 = vector.load %arg2[%c0_45, %c0_46, %c0_47] : memref<3x12x128xbf16, #tpu.memory_space<vmem>>, vector<1x12x128xbf16>
    %51 = vector.shape_cast %50 : vector<1x12x128xbf16> to vector<12x128xbf16>
    %cst_48 = arith.constant dense<0.000000e+00> : vector<128x128xf32>
    %52 = tpu.matmul %49, %51, %cst_48 {dimension_numbers = #tpu.dot_dimension_numbers<[1], [0], [0], [1], [0, 0, 1, 1], [], []>} : vector<128x12xbf16>, vector<12x128xbf16>, vector<128x128xf32> -> vector<128x128xf32>
    %c0_49 = arith.constant 0 : index
    %c272 = arith.constant 272 : index
    %c0_50 = arith.constant 0 : index
    %53 = vector.load %arg1[%c0_49, %c272, %c0_50] : memref<1x416x12xbf16, #tpu.memory_space<vmem>>, vector<1x128x12xbf16>
    %54 = vector.shape_cast %53 : vector<1x128x12xbf16> to vector<128x12xbf16>
    %c1_51 = arith.constant 1 : index
    %c0_52 = arith.constant 0 : index
    %c0_53 = arith.constant 0 : index
    %55 = vector.load %arg2[%c1_51, %c0_52, %c0_53] : memref<3x12x128xbf16, #tpu.memory_space<vmem>>, vector<1x12x128xbf16>
    %56 = vector.shape_cast %55 : vector<1x12x128xbf16> to vector<12x128xbf16>
    %cst_54 = arith.constant dense<0.000000e+00> : vector<128x128xf32>
    %57 = tpu.matmul %54, %56, %cst_54 {dimension_numbers = #tpu.dot_dimension_numbers<[1], [0], [0], [1], [0, 0, 1, 1], [], []>} : vector<128x12xbf16>, vector<12x128xbf16>, vector<128x128xf32> -> vector<128x128xf32>
    %58 = arith.addf %52, %57 : vector<128x128xf32>
    %c0_55 = arith.constant 0 : index
    %c288 = arith.constant 288 : index
    %c0_56 = arith.constant 0 : index
    %59 = vector.load %arg1[%c0_55, %c288, %c0_56] : memref<1x416x12xbf16, #tpu.memory_space<vmem>>, vector<1x128x12xbf16>
    %60 = vector.shape_cast %59 : vector<1x128x12xbf16> to vector<128x12xbf16>
    %c2_57 = arith.constant 2 : index
    %c0_58 = arith.constant 0 : index
    %c0_59 = arith.constant 0 : index
    %61 = vector.load %arg2[%c2_57, %c0_58, %c0_59] : memref<3x12x128xbf16, #tpu.memory_space<vmem>>, vector<1x12x128xbf16>
    %62 = vector.shape_cast %61 : vector<1x12x128xbf16> to vector<12x128xbf16>
    %cst_60 = arith.constant dense<0.000000e+00> : vector<128x128xf32>
    %63 = tpu.matmul %60, %62, %cst_60 {dimension_numbers = #tpu.dot_dimension_numbers<[1], [0], [0], [1], [0, 0, 1, 1], [], []>} : vector<128x12xbf16>, vector<12x128xbf16>, vector<128x128xf32> -> vector<128x128xf32>
    %64 = arith.addf %58, %63 : vector<128x128xf32>
    %c0_61 = arith.constant 0 : index
    %c0_62 = arith.constant 0 : index
    %65 = vector.load %arg3[%c0_61, %c0_62] : memref<1x128xf32, #tpu.memory_space<vmem>>, vector<1x128xf32>
    %66 = vector.broadcast %65 : vector<1x128xf32> to vector<128x128xf32>
    %67 = arith.addf %64, %66 : vector<128x128xf32>
    %cst_63 = arith.constant 0.000000e+00 : f32
    %68 = vector.broadcast %cst_63 : f32 to vector<128x128xf32>
    %69 = arith.maximumf %67, %68 : vector<128x128xf32>
    %70 = vector.extract_strided_slice %69 {offsets = [0, 0], sizes = [128, 8], strides = [1, 1]} : vector<128x128xf32> to vector<128x8xf32>
    %c256_64 = arith.constant 256 : index
    %c0_65 = arith.constant 0 : index
    %71 = vector.load %arg7[%c256_64, %c0_65] : memref<384x8xf32, #tpu.memory_space<vmem>>, vector<128x8xf32>
    tpu.vector_store %arg7[%c256_64, %c0_65], %70 {strides = array<i32>} : memref<384x8xf32, #tpu.memory_space<vmem>>, vector<128x8xf32>,
    %c0_66 = arith.constant 0 : index
    %c0_67 = arith.constant 0 : index
    %72 = vector.load %arg7[%c0_66, %c0_67] : memref<384x8xf32, #tpu.memory_space<vmem>>, vector<128x8xf32>
    %73 = arith.truncf %72 : vector<128x8xf32> to vector<128x8xbf16>
    %c0_68 = arith.constant 0 : index
    %c0_69 = arith.constant 0 : index
    %c0_70 = arith.constant 0 : index
    %74 = vector.load %arg4[%c0_68, %c0_69, %c0_70] : memref<9x8x128xbf16, #tpu.memory_space<vmem>>, vector<1x8x128xbf16>
    %75 = vector.shape_cast %74 : vector<1x8x128xbf16> to vector<8x128xbf16>
    %cst_71 = arith.constant dense<0.000000e+00> : vector<128x128xf32>
    %76 = tpu.matmul %73, %75, %cst_71 {dimension_numbers = #tpu.dot_dimension_numbers<[1], [0], [0], [1], [0, 0, 1, 1], [], []>} : vector<128x8xbf16>, vector<8x128xbf16>, vector<128x128xf32> -> vector<128x128xf32>
    %c1_72 = arith.constant 1 : index
    %c0_73 = arith.constant 0 : index
    %77 = vector.load %arg7[%c1_72, %c0_73] : memref<384x8xf32, #tpu.memory_space<vmem>>, vector<128x8xf32>
    %78 = arith.truncf %77 : vector<128x8xf32> to vector<128x8xbf16>
    %c1_74 = arith.constant 1 : index
    %c0_75 = arith.constant 0 : index
    %c0_76 = arith.constant 0 : index
    %79 = vector.load %arg4[%c1_74, %c0_75, %c0_76] : memref<9x8x128xbf16, #tpu.memory_space<vmem>>, vector<1x8x128xbf16>
    %80 = vector.shape_cast %79 : vector<1x8x128xbf16> to vector<8x128xbf16>
    %cst_77 = arith.constant dense<0.000000e+00> : vector<128x128xf32>
    %81 = tpu.matmul %78, %80, %cst_77 {dimension_numbers = #tpu.dot_dimension_numbers<[1], [0], [0], [1], [0, 0, 1, 1], [], []>} : vector<128x8xbf16>, vector<8x128xbf16>, vector<128x128xf32> -> vector<128x128xf32>
    %82 = arith.addf %76, %81 : vector<128x128xf32>
    %c2_78 = arith.constant 2 : index
    %c0_79 = arith.constant 0 : index
    %83 = vector.load %arg7[%c2_78, %c0_79] : memref<384x8xf32, #tpu.memory_space<vmem>>, vector<128x8xf32>
    %84 = arith.truncf %83 : vector<128x8xf32> to vector<128x8xbf16>
    %c2_80 = arith.constant 2 : index
    %c0_81 = arith.constant 0 : index
    %c0_82 = arith.constant 0 : index
    %85 = vector.load %arg4[%c2_80, %c0_81, %c0_82] : memref<9x8x128xbf16, #tpu.memory_space<vmem>>, vector<1x8x128xbf16>
    %86 = vector.shape_cast %85 : vector<1x8x128xbf16> to vector<8x128xbf16>
    %cst_83 = arith.constant dense<0.000000e+00> : vector<128x128xf32>
    %87 = tpu.matmul %84, %86, %cst_83 {dimension_numbers = #tpu.dot_dimension_numbers<[1], [0], [0], [1], [0, 0, 1, 1], [], []>} : vector<128x8xbf16>, vector<8x128xbf16>, vector<128x128xf32> -> vector<128x128xf32>
    %88 = arith.addf %82, %87 : vector<128x128xf32>
    %c16_84 = arith.constant 16 : index
    %c0_85 = arith.constant 0 : index
    %89 = vector.load %arg7[%c16_84, %c0_85] : memref<384x8xf32, #tpu.memory_space<vmem>>, vector<128x8xf32>
    %90 = arith.truncf %89 : vector<128x8xf32> to vector<128x8xbf16>
    %c3 = arith.constant 3 : index
    %c0_86 = arith.constant 0 : index
    %c0_87 = arith.constant 0 : index
    %91 = vector.load %arg4[%c3, %c0_86, %c0_87] : memref<9x8x128xbf16, #tpu.memory_space<vmem>>, vector<1x8x128xbf16>
    %92 = vector.shape_cast %91 : vector<1x8x128xbf16> to vector<8x128xbf16>
    %cst_88 = arith.constant dense<0.000000e+00> : vector<128x128xf32>
    %93 = tpu.matmul %90, %92, %cst_88 {dimension_numbers = #tpu.dot_dimension_numbers<[1], [0], [0], [1], [0, 0, 1, 1], [], []>} : vector<128x8xbf16>, vector<8x128xbf16>, vector<128x128xf32> -> vector<128x128xf32>
    %94 = arith.addf %88, %93 : vector<128x128xf32>
    %c17 = arith.constant 17 : index
    %c0_89 = arith.constant 0 : index
    %95 = vector.load %arg7[%c17, %c0_89] : memref<384x8xf32, #tpu.memory_space<vmem>>, vector<128x8xf32>
    %96 = arith.truncf %95 : vector<128x8xf32> to vector<128x8xbf16>
    %c4 = arith.constant 4 : index
    %c0_90 = arith.constant 0 : index
    %c0_91 = arith.constant 0 : index
    %97 = vector.load %arg4[%c4, %c0_90, %c0_91] : memref<9x8x128xbf16, #tpu.memory_space<vmem>>, vector<1x8x128xbf16>
    %98 = vector.shape_cast %97 : vector<1x8x128xbf16> to vector<8x128xbf16>
    %cst_92 = arith.constant dense<0.000000e+00> : vector<128x128xf32>
    %99 = tpu.matmul %96, %98, %cst_92 {dimension_numbers = #tpu.dot_dimension_numbers<[1], [0], [0], [1], [0, 0, 1, 1], [], []>} : vector<128x8xbf16>, vector<8x128xbf16>, vector<128x128xf32> -> vector<128x128xf32>
    %100 = arith.addf %94, %99 : vector<128x128xf32>
    %c18 = arith.constant 18 : index
    %c0_93 = arith.constant 0 : index
    %101 = vector.load %arg7[%c18, %c0_93] : memref<384x8xf32, #tpu.memory_space<vmem>>, vector<128x8xf32>
    %102 = arith.truncf %101 : vector<128x8xf32> to vector<128x8xbf16>
    %c5 = arith.constant 5 : index
    %c0_94 = arith.constant 0 : index
    %c0_95 = arith.constant 0 : index
    %103 = vector.load %arg4[%c5, %c0_94, %c0_95] : memref<9x8x128xbf16, #tpu.memory_space<vmem>>, vector<1x8x128xbf16>
    %104 = vector.shape_cast %103 : vector<1x8x128xbf16> to vector<8x128xbf16>
    %cst_96 = arith.constant dense<0.000000e+00> : vector<128x128xf32>
    %105 = tpu.matmul %102, %104, %cst_96 {dimension_numbers = #tpu.dot_dimension_numbers<[1], [0], [0], [1], [0, 0, 1, 1], [], []>} : vector<128x8xbf16>, vector<8x128xbf16>, vector<128x128xf32> -> vector<128x128xf32>
    %106 = arith.addf %100, %105 : vector<128x128xf32>
    %c32_97 = arith.constant 32 : index
    %c0_98 = arith.constant 0 : index
    %107 = vector.load %arg7[%c32_97, %c0_98] : memref<384x8xf32, #tpu.memory_space<vmem>>, vector<128x8xf32>
    %108 = arith.truncf %107 : vector<128x8xf32> to vector<128x8xbf16>
    %c6 = arith.constant 6 : index
    %c0_99 = arith.constant 0 : index
    %c0_100 = arith.constant 0 : index
    %109 = vector.load %arg4[%c6, %c0_99, %c0_100] : memref<9x8x128xbf16, #tpu.memory_space<vmem>>, vector<1x8x128xbf16>
    %110 = vector.shape_cast %109 : vector<1x8x128xbf16> to vector<8x128xbf16>
    %cst_101 = arith.constant dense<0.000000e+00> : vector<128x128xf32>
    %111 = tpu.matmul %108, %110, %cst_101 {dimension_numbers = #tpu.dot_dimension_numbers<[1], [0], [0], [1], [0, 0, 1, 1], [], []>} : vector<128x8xbf16>, vector<8x128xbf16>, vector<128x128xf32> -> vector<128x128xf32>
    %112 = arith.addf %106, %111 : vector<128x128xf32>
    %c33 = arith.constant 33 : index
    %c0_102 = arith.constant 0 : index
    %113 = vector.load %arg7[%c33, %c0_102] : memref<384x8xf32, #tpu.memory_space<vmem>>, vector<128x8xf32>
    %114 = arith.truncf %113 : vector<128x8xf32> to vector<128x8xbf16>
    %c7 = arith.constant 7 : index
    %c0_103 = arith.constant 0 : index
    %c0_104 = arith.constant 0 : index
    %115 = vector.load %arg4[%c7, %c0_103, %c0_104] : memref<9x8x128xbf16, #tpu.memory_space<vmem>>, vector<1x8x128xbf16>
    %116 = vector.shape_cast %115 : vector<1x8x128xbf16> to vector<8x128xbf16>
    %cst_105 = arith.constant dense<0.000000e+00> : vector<128x128xf32>
    %117 = tpu.matmul %114, %116, %cst_105 {dimension_numbers = #tpu.dot_dimension_numbers<[1], [0], [0], [1], [0, 0, 1, 1], [], []>} : vector<128x8xbf16>, vector<8x128xbf16>, vector<128x128xf32> -> vector<128x128xf32>
    %118 = arith.addf %112, %117 : vector<128x128xf32>
    %c34 = arith.constant 34 : index
    %c0_106 = arith.constant 0 : index
    %119 = vector.load %arg7[%c34, %c0_106] : memref<384x8xf32, #tpu.memory_space<vmem>>, vector<128x8xf32>
    %120 = arith.truncf %119 : vector<128x8xf32> to vector<128x8xbf16>
    %c8 = arith.constant 8 : index
    %c0_107 = arith.constant 0 : index
    %c0_108 = arith.constant 0 : index
    %121 = vector.load %arg4[%c8, %c0_107, %c0_108] : memref<9x8x128xbf16, #tpu.memory_space<vmem>>, vector<1x8x128xbf16>
    %122 = vector.shape_cast %121 : vector<1x8x128xbf16> to vector<8x128xbf16>
    %cst_109 = arith.constant dense<0.000000e+00> : vector<128x128xf32>
    %123 = tpu.matmul %120, %122, %cst_109 {dimension_numbers = #tpu.dot_dimension_numbers<[1], [0], [0], [1], [0, 0, 1, 1], [], []>} : vector<128x8xbf16>, vector<8x128xbf16>, vector<128x128xf32> -> vector<128x128xf32>
    %124 = arith.addf %118, %123 : vector<128x128xf32>
    %c0_110 = arith.constant 0 : index
    %c0_111 = arith.constant 0 : index
    %125 = vector.load %arg5[%c0_110, %c0_111] : memref<1x128xf32, #tpu.memory_space<vmem>>, vector<1x128xf32>
    %126 = vector.broadcast %125 : vector<1x128xf32> to vector<128x128xf32>
    %127 = arith.addf %124, %126 : vector<128x128xf32>
    %c0_112 = arith.constant 0 : index
    %c0_113 = arith.constant 0 : index
    %c0_114 = arith.constant 0 : index
    %128 = vector.load %arg6[%c0_112, %c0_113, %c0_114] : memref<1x256x128xf32, #tpu.memory_space<vmem>>, vector<1x128x128xf32>
    %129 = vector.shape_cast %128 : vector<1x128x128xf32> to vector<128x128xf32>
    %130 = vector.shape_cast %127 : vector<128x128xf32> to vector<1x128x128xf32>
    tpu.vector_store %arg6[%c0_112, %c0_113, %c0_114], %130 {strides = array<i32>} : memref<1x256x128xf32, #tpu.memory_space<vmem>>, vector<1x128x128xf32>,
    %c128_115 = arith.constant 128 : index
    %c0_116 = arith.constant 0 : index
    %131 = vector.load %arg7[%c128_115, %c0_116] : memref<384x8xf32, #tpu.memory_space<vmem>>, vector<128x8xf32>
    %132 = arith.truncf %131 : vector<128x8xf32> to vector<128x8xbf16>
    %c0_117 = arith.constant 0 : index
    %c0_118 = arith.constant 0 : index
    %c0_119 = arith.constant 0 : index
    %133 = vector.load %arg4[%c0_117, %c0_118, %c0_119] : memref<9x8x128xbf16, #tpu.memory_space<vmem>>, vector<1x8x128xbf16>
    %134 = vector.shape_cast %133 : vector<1x8x128xbf16> to vector<8x128xbf16>
    %cst_120 = arith.constant dense<0.000000e+00> : vector<128x128xf32>
    %135 = tpu.matmul %132, %134, %cst_120 {dimension_numbers = #tpu.dot_dimension_numbers<[1], [0], [0], [1], [0, 0, 1, 1], [], []>} : vector<128x8xbf16>, vector<8x128xbf16>, vector<128x128xf32> -> vector<128x128xf32>
    %c129 = arith.constant 129 : index
    %c0_121 = arith.constant 0 : index
    %136 = vector.load %arg7[%c129, %c0_121] : memref<384x8xf32, #tpu.memory_space<vmem>>, vector<128x8xf32>
    %137 = arith.truncf %136 : vector<128x8xf32> to vector<128x8xbf16>
    %c1_122 = arith.constant 1 : index
    %c0_123 = arith.constant 0 : index
    %c0_124 = arith.constant 0 : index
    %138 = vector.load %arg4[%c1_122, %c0_123, %c0_124] : memref<9x8x128xbf16, #tpu.memory_space<vmem>>, vector<1x8x128xbf16>
    %139 = vector.shape_cast %138 : vector<1x8x128xbf16> to vector<8x128xbf16>
    %cst_125 = arith.constant dense<0.000000e+00> : vector<128x128xf32>
    %140 = tpu.matmul %137, %139, %cst_125 {dimension_numbers = #tpu.dot_dimension_numbers<[1], [0], [0], [1], [0, 0, 1, 1], [], []>} : vector<128x8xbf16>, vector<8x128xbf16>, vector<128x128xf32> -> vector<128x128xf32>
    %141 = arith.addf %135, %140 : vector<128x128xf32>
    %c130 = arith.constant 130 : index
    %c0_126 = arith.constant 0 : index
    %142 = vector.load %arg7[%c130, %c0_126] : memref<384x8xf32, #tpu.memory_space<vmem>>, vector<128x8xf32>
    %143 = arith.truncf %142 : vector<128x8xf32> to vector<128x8xbf16>
    %c2_127 = arith.constant 2 : index
    %c0_128 = arith.constant 0 : index
    %c0_129 = arith.constant 0 : index
    %144 = vector.load %arg4[%c2_127, %c0_128, %c0_129] : memref<9x8x128xbf16, #tpu.memory_space<vmem>>, vector<1x8x128xbf16>
    %145 = vector.shape_cast %144 : vector<1x8x128xbf16> to vector<8x128xbf16>
    %cst_130 = arith.constant dense<0.000000e+00> : vector<128x128xf32>
    %146 = tpu.matmul %143, %145, %cst_130 {dimension_numbers = #tpu.dot_dimension_numbers<[1], [0], [0], [1], [0, 0, 1, 1], [], []>} : vector<128x8xbf16>, vector<8x128xbf16>, vector<128x128xf32> -> vector<128x128xf32>
    %147 = arith.addf %141, %146 : vector<128x128xf32>
    %c144_131 = arith.constant 144 : index
    %c0_132 = arith.constant 0 : index
    %148 = vector.load %arg7[%c144_131, %c0_132] : memref<384x8xf32, #tpu.memory_space<vmem>>, vector<128x8xf32>
    %149 = arith.truncf %148 : vector<128x8xf32> to vector<128x8xbf16>
    %c3_133 = arith.constant 3 : index
    %c0_134 = arith.constant 0 : index
    %c0_135 = arith.constant 0 : index
    %150 = vector.load %arg4[%c3_133, %c0_134, %c0_135] : memref<9x8x128xbf16, #tpu.memory_space<vmem>>, vector<1x8x128xbf16>
    %151 = vector.shape_cast %150 : vector<1x8x128xbf16> to vector<8x128xbf16>
    %cst_136 = arith.constant dense<0.000000e+00> : vector<128x128xf32>
    %152 = tpu.matmul %149, %151, %cst_136 {dimension_numbers = #tpu.dot_dimension_numbers<[1], [0], [0], [1], [0, 0, 1, 1], [], []>} : vector<128x8xbf16>, vector<8x128xbf16>, vector<128x128xf32> -> vector<128x128xf32>
    %153 = arith.addf %147, %152 : vector<128x128xf32>
    %c145 = arith.constant 145 : index
    %c0_137 = arith.constant 0 : index
    %154 = vector.load %arg7[%c145, %c0_137] : memref<384x8xf32, #tpu.memory_space<vmem>>, vector<128x8xf32>
    %155 = arith.truncf %154 : vector<128x8xf32> to vector<128x8xbf16>
    %c4_138 = arith.constant 4 : index
    %c0_139 = arith.constant 0 : index
    %c0_140 = arith.constant 0 : index
    %156 = vector.load %arg4[%c4_138, %c0_139, %c0_140] : memref<9x8x128xbf16, #tpu.memory_space<vmem>>, vector<1x8x128xbf16>
    %157 = vector.shape_cast %156 : vector<1x8x128xbf16> to vector<8x128xbf16>
    %cst_141 = arith.constant dense<0.000000e+00> : vector<128x128xf32>
    %158 = tpu.matmul %155, %157, %cst_141 {dimension_numbers = #tpu.dot_dimension_numbers<[1], [0], [0], [1], [0, 0, 1, 1], [], []>} : vector<128x8xbf16>, vector<8x128xbf16>, vector<128x128xf32> -> vector<128x128xf32>
    %159 = arith.addf %153, %158 : vector<128x128xf32>
    %c146 = arith.constant 146 : index
    %c0_142 = arith.constant 0 : index
    %160 = vector.load %arg7[%c146, %c0_142] : memref<384x8xf32, #tpu.memory_space<vmem>>, vector<128x8xf32>
    %161 = arith.truncf %160 : vector<128x8xf32> to vector<128x8xbf16>
    %c5_143 = arith.constant 5 : index
    %c0_144 = arith.constant 0 : index
    %c0_145 = arith.constant 0 : index
    %162 = vector.load %arg4[%c5_143, %c0_144, %c0_145] : memref<9x8x128xbf16, #tpu.memory_space<vmem>>, vector<1x8x128xbf16>
    %163 = vector.shape_cast %162 : vector<1x8x128xbf16> to vector<8x128xbf16>
    %cst_146 = arith.constant dense<0.000000e+00> : vector<128x128xf32>
    %164 = tpu.matmul %161, %163, %cst_146 {dimension_numbers = #tpu.dot_dimension_numbers<[1], [0], [0], [1], [0, 0, 1, 1], [], []>} : vector<128x8xbf16>, vector<8x128xbf16>, vector<128x128xf32> -> vector<128x128xf32>
    %165 = arith.addf %159, %164 : vector<128x128xf32>
    %c160_147 = arith.constant 160 : index
    %c0_148 = arith.constant 0 : index
    %166 = vector.load %arg7[%c160_147, %c0_148] : memref<384x8xf32, #tpu.memory_space<vmem>>, vector<128x8xf32>
    %167 = arith.truncf %166 : vector<128x8xf32> to vector<128x8xbf16>
    %c6_149 = arith.constant 6 : index
    %c0_150 = arith.constant 0 : index
    %c0_151 = arith.constant 0 : index
    %168 = vector.load %arg4[%c6_149, %c0_150, %c0_151] : memref<9x8x128xbf16, #tpu.memory_space<vmem>>, vector<1x8x128xbf16>
    %169 = vector.shape_cast %168 : vector<1x8x128xbf16> to vector<8x128xbf16>
    %cst_152 = arith.constant dense<0.000000e+00> : vector<128x128xf32>
    %170 = tpu.matmul %167, %169, %cst_152 {dimension_numbers = #tpu.dot_dimension_numbers<[1], [0], [0], [1], [0, 0, 1, 1], [], []>} : vector<128x8xbf16>, vector<8x128xbf16>, vector<128x128xf32> -> vector<128x128xf32>
    %171 = arith.addf %165, %170 : vector<128x128xf32>
    %c161 = arith.constant 161 : index
    %c0_153 = arith.constant 0 : index
    %172 = vector.load %arg7[%c161, %c0_153] : memref<384x8xf32, #tpu.memory_space<vmem>>, vector<128x8xf32>
    %173 = arith.truncf %172 : vector<128x8xf32> to vector<128x8xbf16>
    %c7_154 = arith.constant 7 : index
    %c0_155 = arith.constant 0 : index
    %c0_156 = arith.constant 0 : index
    %174 = vector.load %arg4[%c7_154, %c0_155, %c0_156] : memref<9x8x128xbf16, #tpu.memory_space<vmem>>, vector<1x8x128xbf16>
    %175 = vector.shape_cast %174 : vector<1x8x128xbf16> to vector<8x128xbf16>
    %cst_157 = arith.constant dense<0.000000e+00> : vector<128x128xf32>
    %176 = tpu.matmul %173, %175, %cst_157 {dimension_numbers = #tpu.dot_dimension_numbers<[1], [0], [0], [1], [0, 0, 1, 1], [], []>} : vector<128x8xbf16>, vector<8x128xbf16>, vector<128x128xf32> -> vector<128x128xf32>
    %177 = arith.addf %171, %176 : vector<128x128xf32>
    %c162 = arith.constant 162 : index
    %c0_158 = arith.constant 0 : index
    %178 = vector.load %arg7[%c162, %c0_158] : memref<384x8xf32, #tpu.memory_space<vmem>>, vector<128x8xf32>
    %179 = arith.truncf %178 : vector<128x8xf32> to vector<128x8xbf16>
    %c8_159 = arith.constant 8 : index
    %c0_160 = arith.constant 0 : index
    %c0_161 = arith.constant 0 : index
    %180 = vector.load %arg4[%c8_159, %c0_160, %c0_161] : memref<9x8x128xbf16, #tpu.memory_space<vmem>>, vector<1x8x128xbf16>
    %181 = vector.shape_cast %180 : vector<1x8x128xbf16> to vector<8x128xbf16>
    %cst_162 = arith.constant dense<0.000000e+00> : vector<128x128xf32>
    %182 = tpu.matmul %179, %181, %cst_162 {dimension_numbers = #tpu.dot_dimension_numbers<[1], [0], [0], [1], [0, 0, 1, 1], [], []>} : vector<128x8xbf16>, vector<8x128xbf16>, vector<128x128xf32> -> vector<128x128xf32>
    %183 = arith.addf %177, %182 : vector<128x128xf32>
    %c0_163 = arith.constant 0 : index
    %c0_164 = arith.constant 0 : index
    %184 = vector.load %arg5[%c0_163, %c0_164] : memref<1x128xf32, #tpu.memory_space<vmem>>, vector<1x128xf32>
    %185 = vector.broadcast %184 : vector<1x128xf32> to vector<128x128xf32>
    %186 = arith.addf %183, %185 : vector<128x128xf32>
    %c0_165 = arith.constant 0 : index
    %c128_166 = arith.constant 128 : index
    %c0_167 = arith.constant 0 : index
    %187 = vector.load %arg6[%c0_165, %c128_166, %c0_167] : memref<1x256x128xf32, #tpu.memory_space<vmem>>, vector<1x128x128xf32>
    %188 = vector.shape_cast %187 : vector<1x128x128xf32> to vector<128x128xf32>
    %189 = vector.shape_cast %186 : vector<128x128xf32> to vector<1x128x128xf32>
    tpu.vector_store %arg6[%c0_165, %c128_166, %c0_167], %189 {strides = array<i32>} : memref<1x256x128xf32, #tpu.memory_space<vmem>>, vector<1x128x128xf32>,
    return
  }
  func.func @transform_0(%arg0: i32) -> (i32, i32, i32) {
    %c0_i32 = arith.constant 0 : i32
    %c0_i32_0 = arith.constant 0 : i32
    %c0_i32_1 = arith.constant 0 : i32
    return %arg0, %c0_i32, %c0_i32_0 : i32, i32, i32
  }
  func.func @transform_1(%arg0: i32) -> (i32, i32, i32) {
    %c0_i32 = arith.constant 0 : i32
    %c0_i32_0 = arith.constant 0 : i32
    %c0_i32_1 = arith.constant 0 : i32
    %c0_i32_2 = arith.constant 0 : i32
    return %c0_i32, %c0_i32_0, %c0_i32_1 : i32, i32, i32
  }
  func.func @transform_2(%arg0: i32) -> (i32, i32) {
    %c0_i32 = arith.constant 0 : i32
    %c0_i32_0 = arith.constant 0 : i32
    %c0_i32_1 = arith.constant 0 : i32
    return %c0_i32, %c0_i32_0 : i32, i32
  }
  func.func @transform_3(%arg0: i32) -> (i32, i32, i32) {
    %c0_i32 = arith.constant 0 : i32
    %c0_i32_0 = arith.constant 0 : i32
    %c0_i32_1 = arith.constant 0 : i32
    %c0_i32_2 = arith.constant 0 : i32
    return %c0_i32, %c0_i32_0, %c0_i32_1 : i32, i32, i32
  }
  func.func @transform_4(%arg0: i32) -> (i32, i32) {
    %c0_i32 = arith.constant 0 : i32
    %c0_i32_0 = arith.constant 0 : i32
    %c0_i32_1 = arith.constant 0 : i32
    return %c0_i32, %c0_i32_0 : i32, i32
  }
  func.func @transform_5(%arg0: i32) -> (i32, i32, i32) {
    %c0_i32 = arith.constant 0 : i32
    %c0_i32_0 = arith.constant 0 : i32
    %c0_i32_1 = arith.constant 0 : i32
    return %arg0, %c0_i32, %c0_i32_0 : i32, i32, i32
  }
}

</mosaic_0001>

<bundles_post_ra>
// kernel: tpu_custom_call.1
= control target key start
LH: loop header
LB: loop body
LE: loop exit
PB: predicated region body
PF: predicated region fallthrough
CT: control target
= control target key end

     0   :  { %10 = vsyncpa [#allocation4], 0  ;;  %s7525_s0 = inlined_call_operand.vmem [shape: bf16[2,416,12], index: 0, kind: input, shape index: {}]   ;;  %s7526_s1 = inlined_call_operand.vmem [shape: bf16[3,12,128], index: 1, kind: input, shape index: {}]   ;;  %s7527_s2 = inlined_call_operand.vmem [shape: f32[1,128], index: 2, kind: input, shape index: {}]   ;;  %s7528_s3 = inlined_call_operand.vmem [shape: bf16[9,8,128], index: 3, kind: input, shape index: {}]   ;;  %s7529_s4 = inlined_call_operand.vmem [shape: f32[1,128], index: 4, kind: input, shape index: {}]   ;;  %s7530_s5 = inlined_call_operand.hbm [shape: f32[2,256,128], index: 5, kind: output, shape index: {}]  }
   0x1   :  { %12 = vsyncpa [#allocation4 + $0x1], 0  ;;  %s6615_s18 = smov 0   ;;  %s6617_s19 = smov 0  }
   0x2   :  { %s6619_s20 = smov 0   ;;  %s6621_s21 = smov 0  }
   0x3 LB: > { %s6636_s22 = sadd.s32 4294967295, %s6580_s21   ;;  %s4984_s23 = sadd.s32 4294967294, %s6580_s21   ;;  %s6580_s21 = sphi %s6621_s21, %s7536_s21   ;;  %s6576_s20 = sphi %s6619_s20, %s7535_s20   ;;  %s6572_s19 = sphi %s6617_s19, %s7534_s19   ;;  %s6568_s18 = sphi %s6615_s18, %s7533_s18  }
   0x4   : > { %s6640_s24 = sadd.s32 1, %s6580_s21   ;;  %s135_s25 = sadd.s32 1, %s6576_s20 }
   0x5   : > { %s132_s26 = ssub.s32 %s6580_s21, %s6640_s24  ;;  %p145_p0 = scmp.ne.s32.totalorder %s6576_s20, %s6572_s19 }
   0x6   : > { %p133_p1 = scmp.eq.s32.totalorder %s132_s26, 0  ;;  %p146_p2 = scmp.eq.s32.totalorder %s6636_s22, 1 }
   0x7   : > { %p151_p3 = scmp.ne.s32.totalorder %s6572_s19, %s6568_s18  ;;  %p152_p4 = scmp.eq.s32.totalorder %s4984_s23, 1 }
   0x8   : > { %s6651_s27 = scalar_select %p133_p1, %s6576_s20, %s135_s25  }
   0x9   : > { %p6653_p5 = por %p146_p2, %p145_p0  ;;  %p6657_p6 = por %p152_p4, %p151_p3 }
   0xa   : > { %p4987_p7 = scmp.ge.s32.totalorder %s6580_s21, 1  ;;  %p190_p8 = scmp.lt.s32.totalorder %s6580_s21, 3 }
   0xc   : > { %p191_p9 = pnand %p4987_p7, %p190_p8 }
   0xd   : > { %v6458_v0 = vld [vmem:[%s7526_s1 + $0x8] sm:$0x3f] (!%p191_p9)   ;;  %vm317_vm0 = vcmask (!%p191_p9), 1045504   ;;  %p218_p10 = scmp.lt.s32.totalorder (!%p191_p9), %s6636_s22, 1  ;;  %v6459_v2 = vld [vmem:[%s7526_s1] sm:$0x3f] (!%p191_p9)  }
   0xe   : > { %194 = sbr.rel (%p191_p9) target bundleno = 887 (0x377), region = 40  ;;  %6388 = vmatprep.subr.msk.bf16.mxu1 (!%p191_p9), %vm317_vm0, %v6458_v0  ;;  %v319_v1 = vsel (!%p191_p9), %vm317_vm0, %v6458_v0, 0  ;;  %v6465_v3 = vld [vmem:[%s7526_s1 + $0x10] sm:$0x3f] (!%p191_p9)   ;;  %6389 = vmatprep.subr.msk.bf16.mxu0 (!%p191_p9), %vm317_vm0, %v6459_v2  ;;  %v432_v4 = vsel (!%p191_p9), %vm317_vm0, %v6459_v2, 0  ;;  %vm292_vm1 = vcmask (!%p191_p9), 97280  }
   0xf   : > { %5549 = vmatpush3.bf16.msra.mxu1 (!%p191_p9), %v319_v1  ;;  %5567 = vmatpush3.bf16.msra.mxu0 (!%p191_p9), %v432_v4  ;;  %v6475_v7 = vld [vmem:[%s7526_s1 + $0x8] sm:$0x3f] (!%p191_p9)   ;;  %v620_v11 = vsel (!%p191_p9), %vm317_vm0, %v6465_v3, 0  ;;  %v6481_v24 = vld [vmem:[%s7526_s1] sm:$0x3f] (!%p191_p9)   ;;  %vm1990_vm2 = vcmask (!%p191_p9), 1043456  }
  0x10   : > { %6390 = vmatprep.subr.msk.bf16.mxu1 (!%p191_p9), %vm317_vm0, %v6459_v2  ;;  %6391 = vmatprep.subr.msk.bf16.mxu0 (!%p191_p9), %vm317_vm0, %v6465_v3  ;;  %v6479_v8 = vld [vmem:[%s7526_s1 + $0x8] sm:$0x3f] (!%p191_p9)   ;;  %v6497_v25 = vld [vmem:[%s7526_s1] sm:$0x3f] (!%p191_p9)   ;;  %v883_v26 = vsel (!%p191_p9), %vm317_vm0, %v6475_v7, 0  ;;  %v996_v33 = vsel (!%p191_p9), %vm317_vm0, %v6481_v24, 0 }
  0x11   : > { %v1445_v19 = vsel (!%p191_p9), %vm317_vm0, %v6479_v8, 0  ;;  %v1558_v36 = vsel (!%p191_p9), %vm317_vm0, %v6497_v25, 0  ;;  %v6499_v37 = vld [vmem:[%s7526_s1 + $0x10] sm:$0x3f] (!%p191_p9)   ;;  %v5137_v63 = vld [vmem:[%s7528_s3 + $0x4] sm:$0xf] (!%p191_p9) }
  0x12   : > { %v6501_v38 = vld [vmem:[%s7526_s1 + $0x10] sm:$0x3f] (!%p191_p9)   ;;  %v1183_v51 = vsel (!%p191_p9), %vm317_vm0, %v6499_v37, 0  ;;  %v1992_v0 = vsel (!%p191_p9), %vm1990_vm2, %v5137_v63, 0  ;;  %vm774_vm3 = vcmask (!%p191_p9), 64512   ;;  %s5304_s7 = sshll.u32 (!%p191_p9), %s6636_s22, 12 }
  0x13   : > { %v1745_v52 = vsel (!%p191_p9), %vm317_vm0, %v6501_v38, 0  ;;  %s7474_s11 = scalar_lea.hbm (!%p191_p9), %s7530_s5, %s5304_s7  ;;  %s6582_s13 = smov (!%p191_p9), [#allocation3]  }
  0x14   : > { %s6522_s14 = sshll.u32 (!%p191_p9), %s6582_s13, 4  ;;  %s6523_s14 = int_to_ptr.vmem [resolvable:$false] %s6522_s14 }
  0x15   : > { %s219_s9 = scalar_select %p218_p10, %s6636_s22, 1 }
  0x16   : > { %s6524_s16 = scalar_lea.vmem %s6523_s14, 8192 }
  0x17   : > { %s6416_s12 = smul.u32 208, %s219_s9 }
  0x19   : > { %s6683_s15 = scalar_lea.vmem %s7525_s0, %s6416_s12 }
  0x1a   : > { %v6460_v5 = vld [vmem:[%s6683_s15 + $0x8] sm:$0xff]   ;;  %v6461_v6 = vld [vmem:[%s6683_s15] sm:$0xff]   ;;  %v6462_v9 = vld [vmem:[%s6683_s15 + $0x10] sm:$0xff]  }
  0x1b   : > { %5550 = vmatprep.mubr.msk.bf16.mxu1 %vm292_vm1, %v6460_v5  ;;  %5568 = vmatprep.mubr.msk.bf16.mxu0 %vm292_vm1, %v6461_v6  ;;  %v6463_v10 = vld [vmem:[%s6683_s15 + $0x18] sm:$0xff]   ;;  %v6464_v12 = vld [vmem:[%s6683_s15 + $0x20] sm:$0xff]   ;;  %v6466_v13 = vld [vmem:[%s6683_s15 + $0x28] sm:$0xff]  }
  0x1c   : > { %5551 = vmatmul.mubr.msk.bf16.vlgmr.msra.gmra.mrb[0].mxu1 %vm292_vm1, %v6462_v9  ;;  %5569 = vmatmul.mubr.msk.bf16.vlgmr.msra.gmra.mrb[0].mxu0 %vm292_vm1, %v6460_v5  ;;  %v6467_v14 = vld [vmem:[%s6683_s15 + $0x10] sm:$0xff]   ;;  %v6469_v16 = vld [vmem:[%s6683_s15 + $0x18] sm:$0xff]   ;;  %v6471_v18 = vld [vmem:[%s6683_s15 + $0x20] sm:$0xff]  }
  0x1d   : > { %6035 = vmatpush3.bf16.msra.mxu1 %v432_v4  ;;  %5554 = vmatprep.mubr.msk.bf16.mxu1 %vm292_vm1, %v6463_v10  ;;  %v6468_v15 = vld [vmem:[%s6683_s15 + $0x30] sm:$0xff]   ;;  %v6470_v17 = vld [vmem:[%s6683_s15 + $0x38] sm:$0xff]   ;;  %v6472_v20 = vld [vmem:[%s6683_s15 + $0x40] sm:$0xff]  }
  0x1e   : > { %5572 = vmatprep.mubr.msk.bf16.mxu0 %vm292_vm1, %v6462_v9  ;;  %5585 = vmatpush3.bf16.msra.mxu0 %v620_v11  ;;  %v6473_v21 = vld [vmem:[%s6683_s15 + $0x28] sm:$0xff]   ;;  %v6474_v22 = vld [vmem:[%s6683_s15 + $0x30] sm:$0xff]   ;;  %v6476_v23 = vld [vmem:[%s6683_s15 + $0x38] sm:$0xff]  }
  0x1f   : > { %6392 = vmatprep.subr.msk.bf16.mxu1 %vm317_vm0, %v6475_v7  ;;  %6395 = vmatprep.subr.msk.bf16.mxu0 %vm317_vm0, %v6479_v8  ;;  %v6477_v27 = vld [vmem:[%s6683_s15 + $0x40] sm:$0xff]   ;;  %v6478_v28 = vld [vmem:[%s6683_s15 + $0x48] sm:$0xff]   ;;  %v6483_v31 = vld [vmem:[%s6683_s15 + $0x50] sm:$0xff]  }
  0x20   : > { %v6480_v29 = vld [vmem:[%s6683_s15 + $0x48] sm:$0xff]   ;;  %v6484_v32 = vld [vmem:[%s6683_s15 + $0x90] sm:$0xff]   ;;  %v6485_v34 = vld [vmem:[%s6683_s15 + $0x58] sm:$0xff]  }
  0x21   : > { %v6482_v30 = vld [vmem:[%s6683_s15 + $0x88] sm:$0xff]   ;;  %v6486_v35 = vld [vmem:[%s6683_s15 + $0x98] sm:$0xff]   ;;  %v6487_v39 = vld [vmem:[%s6683_s15 + $0x60] sm:$0xff]  }
  0x22   : > { %v6488_v40 = vld [vmem:[%s6683_s15 + $0xa0] sm:$0xff]   ;;  %v6489_v41 = vld [vmem:[%s6683_s15 + $0x68] sm:$0xff]   ;;  %v6491_v43 = vld [vmem:[%s6683_s15 + $0x70] sm:$0xff]  }
  0x23   : > { %v6490_v42 = vld [vmem:[%s6683_s15 + $0xa8] sm:$0xff]   ;;  %v6492_v44 = vld [vmem:[%s6683_s15 + $0xb0] sm:$0xff]   ;;  %v6493_v45 = vld [vmem:[%s6683_s15 + $0x78] sm:$0xff]  }
  0x24   : > { %5555 = vmatmul.mubr.msk.bf16.gmra.mrb[4].mxu1 %vm292_vm1, %v6464_v12  ;;  %5573 = vmatmul.mubr.msk.bf16.gmra.mrb[4].mxu0 %vm292_vm1, %v6463_v10  ;;  %v6494_v46 = vld [vmem:[%s6683_s15 + $0xb8] sm:$0xff]   ;;  %v6495_v47 = vld [vmem:[%s6683_s15 + $0x80] sm:$0xff]   ;;  %v6502_v53 = vld [vmem:[%s6683_s15 + $0x50] sm:$0xff]  }
  0x25   : > { %5558 = vmatprep.mubr.msk.bf16.mxu1 %vm292_vm1, %v6466_v13  ;;  %5586 = vmatprep.mubr.msk.bf16.mxu0 %vm292_vm1, %v6467_v14  ;;  %v6496_v48 = vld [vmem:[%s6683_s15 + $0xc0] sm:$0xff]   ;;  %v6503_v54 = vld [vmem:[%s6683_s15 + $0x90] sm:$0xff]   ;;  %v6504_v55 = vld [vmem:[%s6683_s15 + $0x58] sm:$0xff]  }
  0x26   : > { %v6498_v49 = vld [vmem:[%s6683_s15 + $0x40] sm:$0xff]   ;;  %v6505_v56 = vld [vmem:[%s6683_s15 + $0x98] sm:$0xff]   ;;  %v6508_v59 = vld [vmem:[%s6683_s15 + $0x68] sm:$0xff]  }
  0x27   : > { %v6500_v50 = vld [vmem:[%s6683_s15 + $0x80] sm:$0xff]   ;;  %v6509_v60 = vld [vmem:[%s6683_s15 + $0xa8] sm:$0xff]   ;;  %v6510_v61 = vld [vmem:[%s6683_s15 + $0x70] sm:$0xff]  }
  0x28   : > { %v6506_v57 = vld [vmem:[%s6683_s15 + $0x60] sm:$0xff]   ;;  %v6511_v62 = vld [vmem:[%s6683_s15 + $0xb0] sm:$0xff]   ;;  %v6512_v1 = vld [vmem:[%s6683_s15 + $0x78] sm:$0xff]  }
  0x29   : > { %v6507_v58 = vld [vmem:[%s6683_s15 + $0xa0] sm:$0xff]   ;;  %v6513_v2 = vld [vmem:[%s6683_s15 + $0xb8] sm:$0xff]   ;;  %v6516_v5 = vld [vmem:[%s6683_s15 + $0x88] sm:$0xff]  }
  0x2a   : > { %v6514_v3 = vld [vmem:[%s6683_s15 + $0x80] sm:$0xff]   ;;  %v6517_v6 = vld [vmem:[%s6683_s15 + $0xc8] sm:$0xff]  }
  0x2b   : > { %v6515_v4 = vld [vmem:[%s6683_s15 + $0xc0] sm:$0xff]   ;;  %s215_s15 = sand.u32 1, %s6572_s19  }
  0x2c   : > { %5559 = vmatmul.mubr.msk.bf16.gmra.mrb[8].mxu1 %vm292_vm1, %v6468_v15  ;;  %5587 = vmatmul.mubr.msk.bf16.vlgmr.msra.gmra.mrb[0].mxu0 %vm292_vm1, %v6469_v16  ;;  %v5218_v7 = vld [vmem:[%s7528_s3 + $0x4] sm:$0xf]  ;;  %s4988_s25 = sshll.u32 %s215_s15, 8  ;;  %s7484_s22 = scalar_lea.sflag [#allocation4], %s215_s15 }
  0x2d   : > { %5562 = vmatprep.mubr.msk.bf16.mxu1 %vm292_vm1, %v6470_v17  ;;  %5590 = vmatprep.mubr.msk.bf16.mxu0 %vm292_vm1, %v6471_v18  ;;  %v3491_v8 = vsel %vm1990_vm2, %v5218_v7, 0  ;;  %s7409_s6 = scalar_lea.vmem [#allocation3], %s4988_s25 }
  0x2e   : > { %5657 = vmatpush3.bf16.msra.mxu0 %v1445_v19  ;;  %s4922_s8 = sshll.u32 %s7409_s6, 4  ;;  %s7476_s8 = int_to_ptr.vmem [resolvable:$true] %s4922_s8 }
  0x2f   : > { %6396 = vmatprep.subr.msk.bf16.mxu0 %vm317_vm0, %v6497_v25  ;;  %s6518_s12 = scalar_lea.vmem %s7476_s8, 4096  ;;  %p6525_p0 = scmp.lt.s32.totalorder %s7476_s8, %s6523_s14 }
  0x30   : > { %p6519_p11 = scmp.ne.s32.totalorder %s7476_s8, %s6518_s12  ;;  %p6526_p1 = scmp.lt.s32.totalorder %s6524_s16, %s6518_s12 }
  0x32   : > { %p6520_p12 = pnand %p6519_p11, %p6653_p5  ;;  %p6527_p2 = por %p6526_p1, %p6525_p0 }
  0x34   : > { %5563 = vmatmul.mubr.msk.bf16.gmra.mrb[12].mxu1 %vm292_vm1, %v6472_v20  ;;  %5591 = vmatmul.mubr.msk.bf16.gmra.mrb[4].mxu0 %vm292_vm1, %v6473_v21  ;;  %v6866_v20 = vld [vmem:[%s7527_s2] ss:$0 sm:$0xff]  ;;  %p6521_p13 = pneg %p6520_p12 }
  0x35   : > { %5576 = vmatprep.mubr.msk.bf16.mxu1 %vm292_vm1, %v6464_v12  ;;  %5594 = vmatprep.mubr.msk.bf16.mxu0 %vm292_vm1, %v6474_v22 }
  0x36   : > { %p6528_p3 = pnand %p6527_p2, %p6521_p13 }
  0x3c   : > { %5577 = vmatmul.mubr.msk.bf16.vlgmr.msra.gmra.mrb[8].mxu1 %vm292_vm1, %v6466_v13  ;;  %5595 = vmatmul.mubr.msk.bf16.gmra.mrb[8].mxu0 %vm292_vm1, %v6476_v23  ;;  %v6852_v13 = vld [vmem:[%s7528_s3] sm:$0xf] }
  0x3d   : > { %5603 = vmatpush3.bf16.msra.mxu1 %v883_v26  ;;  %5580 = vmatprep.mubr.msk.bf16.mxu1 %vm292_vm1, %v6468_v15  ;;  %v6859_v15 = vld [vmem:[%s7528_s3] sm:$0xf] }
  0x3e   : > { %5598 = vmatprep.mubr.msk.bf16.mxu0 %vm292_vm1, %v6477_v27  ;;  %6393 = vmatprep.subr.msk.bf16.mxu1 %vm317_vm0, %v6481_v24 }
  0x44   : > { %5581 = vmatmul.mubr.msk.bf16.gmra.mrb[12].mxu1 %vm292_vm1, %v6470_v17  ;;  %5599 = vmatmul.mubr.msk.bf16.gmra.mrb[12].mxu0 %vm292_vm1, %v6478_v28 }
  0x45   : > { %5604 = vmatprep.mubr.msk.bf16.mxu1 %vm292_vm1, %v6480_v29  ;;  %5658 = vmatprep.mubr.msk.bf16.mxu0 %vm292_vm1, %v6482_v30 }
  0x4c   : > { %5605 = vmatmul.mubr.msk.bf16.vlgmr.msra.gmra.mrb[16].mxu1 %vm292_vm1, %v6483_v31  ;;  %5659 = vmatmul.mubr.msk.bf16.vlgmr.msra.gmra.mrb[16].mxu0 %vm292_vm1, %v6484_v32 }
  0x4d   : > { %5621 = vmatpush3.bf16.msra.mxu1 %v996_v33  ;;  %5608 = vmatprep.mubr.msk.bf16.mxu1 %vm292_vm1, %v6485_v34 }
  0x4e   : > { %5662 = vmatprep.mubr.msk.bf16.mxu0 %vm292_vm1, %v6486_v35  ;;  %5675 = vmatpush3.bf16.msra.mxu0 %v1558_v36 }
  0x4f   : > { %6394 = vmatprep.subr.msk.bf16.mxu1 %vm317_vm0, %v6499_v37  ;;  %6397 = vmatprep.subr.msk.bf16.mxu0 %vm317_vm0, %v6501_v38 }
  0x54   : > { %5609 = vmatmul.mubr.msk.bf16.gmra.mrb[20].mxu1 %vm292_vm1, %v6487_v39  ;;  %5663 = vmatmul.mubr.msk.bf16.gmra.mrb[20].mxu0 %vm292_vm1, %v6488_v40 }
  0x55   : > { %5612 = vmatprep.mubr.msk.bf16.mxu1 %vm292_vm1, %v6489_v41  ;;  %5666 = vmatprep.mubr.msk.bf16.mxu0 %vm292_vm1, %v6490_v42 }
  0x5c   : > { %5613 = vmatmul.mubr.msk.bf16.gmra.mrb[24].mxu1 %vm292_vm1, %v6491_v43  ;;  %5667 = vmatmul.mubr.msk.bf16.gmra.mrb[24].mxu0 %vm292_vm1, %v6492_v44 }
  0x5d   : > { %5616 = vmatprep.mubr.msk.bf16.mxu1 %vm292_vm1, %v6493_v45  ;;  %5670 = vmatprep.mubr.msk.bf16.mxu0 %vm292_vm1, %v6494_v46 }
  0x64   : > { %5617 = vmatmul.mubr.msk.bf16.gmra.mrb[28].mxu1 %vm292_vm1, %v6495_v47  ;;  %5671 = vmatmul.mubr.msk.bf16.gmra.mrb[28].mxu0 %vm292_vm1, %v6496_v48 }
  0x65   : > { %5622 = vmatprep.mubr.msk.bf16.mxu1 %vm292_vm1, %v6498_v49  ;;  %5676 = vmatprep.mubr.msk.bf16.mxu0 %vm292_vm1, %v6500_v50 }
  0x6c   : > { %5623 = vmatmul.mubr.msk.bf16.vlgmr.msra.gmra.mrb[16].mxu1 %vm292_vm1, %v6480_v29  ;;  %5677 = vmatmul.mubr.msk.bf16.vlgmr.msra.gmra.mrb[16].mxu0 %vm292_vm1, %v6482_v30 }
  0x6d   : > { %5639 = vmatpush3.bf16.msra.mxu1 %v1183_v51  ;;  %5626 = vmatprep.mubr.msk.bf16.mxu1 %vm292_vm1, %v6483_v31 }
  0x6e   : > { %5680 = vmatprep.mubr.msk.bf16.mxu0 %vm292_vm1, %v6484_v32  ;;  %5693 = vmatpush3.bf16.msra.mxu0 %v1745_v52 }
  0x6f   : > { %6398 = vmatprep.subr.msk.bf16.mxu1 %vm1990_vm2, %v5137_v63  ;;  %6407 = vmatprep.subr.msk.bf16.mxu0 %vm1990_vm2, %v5218_v7 }
  0x74   : > { %5627 = vmatmul.mubr.msk.bf16.gmra.mrb[20].mxu1 %vm292_vm1, %v6485_v34  ;;  %5681 = vmatmul.mubr.msk.bf16.gmra.mrb[20].mxu0 %vm292_vm1, %v6486_v35 }
  0x75   : > { %5630 = vmatprep.mubr.msk.bf16.mxu1 %vm292_vm1, %v6487_v39  ;;  %5684 = vmatprep.mubr.msk.bf16.mxu0 %vm292_vm1, %v6488_v40 }
  0x7c   : > { %5631 = vmatmul.mubr.msk.bf16.gmra.mrb[24].mxu1 %vm292_vm1, %v6489_v41  ;;  %5685 = vmatmul.mubr.msk.bf16.gmra.mrb[24].mxu0 %vm292_vm1, %v6490_v42 }
  0x7d   : > { %5634 = vmatprep.mubr.msk.bf16.mxu1 %vm292_vm1, %v6491_v43  ;;  %5688 = vmatprep.mubr.msk.bf16.mxu0 %vm292_vm1, %v6492_v44 }
  0x84   : > { %5635 = vmatmul.mubr.msk.bf16.gmra.mrb[28].mxu1 %vm292_vm1, %v6493_v45  ;;  %5689 = vmatmul.mubr.msk.bf16.gmra.mrb[28].mxu0 %vm292_vm1, %v6494_v46 }
  0x85   : > { %5640 = vmatprep.mubr.msk.bf16.mxu1 %vm292_vm1, %v6502_v53  ;;  %5694 = vmatprep.mubr.msk.bf16.mxu0 %vm292_vm1, %v6503_v54 }
  0x8c   : > { %5641 = vmatmul.mubr.msk.bf16.vlgmr.msra.gmra.mrb[16].mxu1 %vm292_vm1, %v6504_v55  ;;  %5695 = vmatmul.mubr.msk.bf16.vlgmr.msra.gmra.mrb[16].mxu0 %vm292_vm1, %v6505_v56 }
  0x8d   : > { %5644 = vmatprep.mubr.msk.bf16.mxu1 %vm292_vm1, %v6506_v57  ;;  %5698 = vmatprep.mubr.msk.bf16.mxu0 %vm292_vm1, %v6507_v58 }
  0x8e   : > { %5711 = vmatpush3.bf16.msra.mxu1 %v1992_v0  ;;  %5873 = vmatpush3.bf16.msra.mxu0 %v3491_v8 }
  0x8f   : > { %6399 = vmatprep.subr.msk.bf16.mxu1 %vm1990_vm2, %v6852_v13  ;;  %6408 = vmatprep.subr.msk.bf16.mxu0 %vm1990_vm2, %v6859_v15 }
  0x94   : > { %5645 = vmatmul.mubr.msk.bf16.gmra.mrb[20].mxu1 %vm292_vm1, %v6508_v59  ;;  %5699 = vmatmul.mubr.msk.bf16.gmra.mrb[20].mxu0 %vm292_vm1, %v6509_v60 }
  0x95   : > { %5648 = vmatprep.mubr.msk.bf16.mxu1 %vm292_vm1, %v6510_v61  ;;  %5702 = vmatprep.mubr.msk.bf16.mxu0 %vm292_vm1, %v6511_v62 }
  0x9c   : > { %5649 = vmatmul.mubr.msk.bf16.gmra.mrb[24].mxu1 %vm292_vm1, %v6512_v1  ;;  %5703 = vmatmul.mubr.msk.bf16.gmra.mrb[24].mxu0 %vm292_vm1, %v6513_v2 }
  0x9d   : > { %5652 = vmatprep.mubr.msk.bf16.mxu1 %vm292_vm1, %v6514_v3  ;;  %5706 = vmatprep.mubr.msk.bf16.mxu0 %vm292_vm1, %v6515_v4 }
  0xa4   : > { %5653 = vmatmul.mubr.msk.bf16.gmra.mrb[28].mxu1 %vm292_vm1, %v6516_v5  ;;  %5707 = vmatmul.mubr.msk.bf16.gmra.mrb[28].mxu0 %vm292_vm1, %v6517_v6 }
  0xef   : > { %v5552_v9 = vpop.f32.mrb[0].mxu1 }
  0xf0   : > { %v355_v10 = vpop.f32.mrb[1].mxu1 }
  0xf1   : > { %v5553_v11 = vpop.f32.mrb[2].mxu1 }
  0xf2   : > { %v358_v12 = vpop.f32.mrb[3].mxu1 }
  0xf7   : > { %v5556_v14 = vpop.f32.mrb[4].mxu1 }
  0xf8   : > { %v371_v16 = vpop.f32.mrb[5].mxu1 }
  0xf9   : > { %v5557_v17 = vpop.f32.mrb[6].mxu1 }
  0xfa   : > { %v374_v18 = vpop.f32.mrb[7].mxu1 }
  0xff   : > { %v5588_v19 = vpop.f32.mrb[0].mxu0 }
 0x100   : > { %v6036_v21 = vadd.f32 %v5588_v19, %v5552_v9  ;;  %v656_v22 = vpop.f32.mrb[1].mxu0 }
 0x101   : > { %v6037_v23 = vadd.f32 %v656_v22, %v355_v10  ;;  %v5589_v24 = vpop.f32.mrb[2].mxu0 }
 0x102   : > { %v744_v25 = vadd.f32 %v6036_v21, %v6866_v20  ;;  %v6038_v26 = vadd.f32 %v5589_v24, %v5553_v11  ;;  %v659_v27 = vpop.f32.mrb[3].mxu0 }
 0x103   : > { %v742_v28 = vadd.f32 %v6037_v23, %v6866_v20  ;;  %v6039_v29 = vadd.f32 %v659_v27, %v358_v12 }
 0x104   : > { %v760_v30 = vmax.f32 %v744_v25, 0.0  ;;  %v745_v31 = vadd.f32 %v6038_v26, %v6866_v20  ;;  %v6899_v25 = vld [vmem:[%s7528_s3 + $0x8] sm:$0xf] }
 0x105   : > { %v758_v32 = vmax.f32 %v742_v28, 0.0  ;;  %v743_v33 = vadd.f32 %v6039_v29, %v6866_v20 }
 0x106   : > { %777 = vst.msk [vmem:[#allocation2 + $0x10] sm:$0xff] %vm774_vm3, %v760_v30  ;;  %v761_v34 = vmax.f32 %v745_v31, 0.0 }
 0x107   : > { %775 = vst.msk [vmem:[#allocation2] sm:$0xff] %vm774_vm3, %v758_v32  ;;  %v759_v35 = vmax.f32 %v743_v33, 0.0  ;;  %v5592_v36 = vpop.f32.mrb[4].mxu0 }
 0x108   : > { %778 = vst.msk [vmem:[#allocation2 + $0x18] sm:$0xff] %vm774_vm3, %v761_v34  ;;  %v6040_v37 = vadd.f32 %v5592_v36, %v5556_v14  ;;  %v672_v38 = vpop.f32.mrb[5].mxu0 }
 0x109   : > { %776 = vst.msk [vmem:[#allocation2 + $0x8] sm:$0xff] %vm774_vm3, %v759_v35  ;;  %v6041_v39 = vadd.f32 %v672_v38, %v371_v16  ;;  %v5593_v40 = vpop.f32.mrb[6].mxu0 }
 0x10a   : > { %v748_v41 = vadd.f32 %v6040_v37, %v6866_v20  ;;  %v6042_v42 = vadd.f32 %v5593_v40, %v5557_v17  ;;  %v675_v43 = vpop.f32.mrb[7].mxu0 }
 0x10b   : > { %v746_v44 = vadd.f32 %v6041_v39, %v6866_v20  ;;  %v6043_v45 = vadd.f32 %v675_v43, %v374_v18  ;;  %v2116_v18 = vsel %vm1990_vm2, %v6852_v13, 0 }
 0x10c   : > { %v764_v46 = vmax.f32 %v748_v41, 0.0  ;;  %v749_v47 = vadd.f32 %v6042_v42, %v6866_v20 }
 0x10d   : > { %v762_v48 = vmax.f32 %v746_v44, 0.0  ;;  %v747_v49 = vadd.f32 %v6043_v45, %v6866_v20 }
 0x10e   : > { %781 = vst.msk [vmem:[#allocation2 + $0x30] sm:$0xff] %vm774_vm3, %v764_v46  ;;  %v765_v50 = vmax.f32 %v749_v47, 0.0 }
 0x10f   : > { %779 = vst.msk [vmem:[#allocation2 + $0x20] sm:$0xff] %vm774_vm3, %v762_v48  ;;  %v763_v51 = vmax.f32 %v747_v49, 0.0  ;;  %v5578_v52 = vpop.f32.mrb[8].mxu1  ;;  %v5596_v53 = vpop.f32.mrb[8].mxu0  ;;  %v1942_v10 = vld [vmem:[#allocation2 + $0x11] sm:$0xff] }
 0x110   : > { %782 = vst.msk [vmem:[#allocation2 + $0x38] sm:$0xff] %vm774_vm3, %v765_v50  ;;  %v6044_v54 = vadd.f32 %v5596_v53, %v5578_v52  ;;  %v500_v55 = vpop.f32.mrb[9].mxu1  ;;  %v688_v56 = vpop.f32.mrb[9].mxu0  ;;  %v1940_v57 = vld [vmem:[#allocation2 + $0x1] sm:$0xff]  ;;  %v1941_v58 = vld [vmem:[#allocation2 + $0x9] sm:$0xff] }
 0x111   : > { %780 = vst.msk [vmem:[#allocation2 + $0x28] sm:$0xff] %vm774_vm3, %v763_v51  ;;  %v6045_v59 = vadd.f32 %v688_v56, %v500_v55  ;;  %v5579_v60 = vpop.f32.mrb[10].mxu1  ;;  %v5597_v61 = vpop.f32.mrb[10].mxu0  ;;  %v1956_v62 = vpack.c.bf16 %v1941_v58, %v1940_v57 }
 0x112   : > { %v752_v63 = vadd.f32 %v6044_v54, %v6866_v20  ;;  %v6046_v0 = vadd.f32 %v5597_v61, %v5579_v60  ;;  %v503_v1 = vpop.f32.mrb[11].mxu1  ;;  %v691_v2 = vpop.f32.mrb[11].mxu0 }
 0x113   : > { %v750_v3 = vadd.f32 %v6045_v59, %v6866_v20  ;;  %v6047_v4 = vadd.f32 %v691_v2, %v503_v1  ;;  %5712 = vmatprep.mubr.msk.bf16.mxu1 %vm774_vm3, %v1956_v62 }
 0x114   : > { %v768_v5 = vmax.f32 %v752_v63, 0.0  ;;  %v753_v6 = vadd.f32 %v6046_v0, %v6866_v20 }
 0x115   : > { %v766_v7 = vmax.f32 %v750_v3, 0.0  ;;  %v751_v8 = vadd.f32 %v6047_v4, %v6866_v20 }
 0x116   : > { %785 = vst.msk [vmem:[#allocation2 + $0x50] sm:$0xff] %vm774_vm3, %v768_v5  ;;  %v769_v9 = vmax.f32 %v753_v6, 0.0  ;;  %v1943_v11 = vld [vmem:[#allocation2 + $0x19] sm:$0xff] }
 0x117   : > { %783 = vst.msk [vmem:[#allocation2 + $0x40] sm:$0xff] %vm774_vm3, %v766_v7  ;;  %v767_v12 = vmax.f32 %v751_v8, 0.0  ;;  %v5582_v14 = vpop.f32.mrb[12].mxu1  ;;  %v5600_v16 = vpop.f32.mrb[12].mxu0  ;;  %v6891_v17 = vpack.c.bf16 %v1943_v11, %v1942_v10  ;;  %v1946_v40 = vld [vmem:[#allocation2 + $0x31] sm:$0xff] }
 0x118   : > { %786 = vst.msk [vmem:[#allocation2 + $0x58] sm:$0xff] %vm774_vm3, %v769_v9  ;;  %v6048_v19 = vadd.f32 %v5600_v16, %v5582_v14  ;;  %v516_v21 = vpop.f32.mrb[13].mxu1  ;;  %v704_v22 = vpop.f32.mrb[13].mxu0  ;;  %v1944_v23 = vld [vmem:[#allocation2 + $0x21] sm:$0xff]  ;;  %v1945_v24 = vld [vmem:[#allocation2 + $0x29] sm:$0xff] }
 0x119   : > { %784 = vst.msk [vmem:[#allocation2 + $0x48] sm:$0xff] %vm774_vm3, %v767_v12  ;;  %v6049_v26 = vadd.f32 %v704_v22, %v516_v21  ;;  %v5583_v27 = vpop.f32.mrb[14].mxu1  ;;  %v5601_v28 = vpop.f32.mrb[14].mxu0  ;;  %5713 = vmatmul.mubr.msk.bf16.vlgmr.msra.gmra.mrb[32].mxu1 %vm774_vm3, %v6891_v17  ;;  %v6904_v13 = vpack.c.bf16 %v1945_v24, %v1944_v23 }
 0x11a   : > { %v756_v29 = vadd.f32 %v6048_v19, %v6866_v20  ;;  %v6050_v30 = vadd.f32 %v5601_v28, %v5583_v27  ;;  %v519_v31 = vpop.f32.mrb[15].mxu1  ;;  %v707_v32 = vpop.f32.mrb[15].mxu0  ;;  %5729 = vmatpush3.bf16.msra.mxu1 %v2116_v18 }
 0x11b   : > { %v754_v33 = vadd.f32 %v6049_v26, %v6866_v20  ;;  %v6051_v34 = vadd.f32 %v707_v32, %v519_v31  ;;  %5716 = vmatprep.mubr.msk.bf16.mxu1 %vm774_vm3, %v6904_v13  ;;  %6400 = vmatprep.subr.msk.bf16.mxu1 %vm1990_vm2, %v6899_v25 }
 0x11c   : > { %v772_v35 = vmax.f32 %v756_v29, 0.0  ;;  %v757_v36 = vadd.f32 %v6050_v30, %v6866_v20 }
 0x11d   : > { %v770_v37 = vmax.f32 %v754_v33, 0.0  ;;  %v755_v38 = vadd.f32 %v6051_v34, %v6866_v20  ;;  %v1916_v34 = vld [vmem:[#allocation2 + $0x8] sm:$0xff] }
 0x11e   : > { %789 = vst.msk [vmem:[#allocation2 + $0x70] sm:$0xff] %vm774_vm3, %v772_v35  ;;  %v773_v39 = vmax.f32 %v757_v36, 0.0  ;;  %v1947_v41 = vld [vmem:[#allocation2 + $0x39] sm:$0xff] }
 0x11f   : > { %787 = vst.msk [vmem:[#allocation2 + $0x60] sm:$0xff] %vm774_vm3, %v770_v37  ;;  %v771_v42 = vmax.f32 %v755_v38, 0.0  ;;  %v6916_v43 = vpack.c.bf16 %v1947_v41, %v1946_v40  ;;  %v1950_v47 = vld [vmem:[#allocation2 + $0x51] sm:$0xff]  ;;  %v1915_v40 = vld [vmem:[#allocation2] sm:$0xff] }
 0x120   : > { %790 = vst.msk [vmem:[#allocation2 + $0x78] sm:$0xff] %vm774_vm3, %v773_v39  ;;  %v1948_v44 = vld [vmem:[#allocation2 + $0x41] sm:$0xff]  ;;  %v1949_v45 = vld [vmem:[#allocation2 + $0x49] sm:$0xff]  ;;  %v1931_v41 = vpack.c.bf16 %v1916_v34, %v1915_v40 }
 0x121   : > { %788 = vst.msk [vmem:[#allocation2 + $0x68] sm:$0xff] %vm774_vm3, %v771_v42  ;;  %5717 = vmatmul.mubr.msk.bf16.gmra.mrb[36].mxu1 %vm774_vm3, %v6916_v43  ;;  %v6922_v46 = vpack.c.bf16 %v1949_v45, %v1948_v44 }
 0x123   : > { %5720 = vmatprep.mubr.msk.bf16.mxu1 %vm774_vm3, %v6922_v46 }
 0x126   : > { %v1951_v48 = vld [vmem:[#allocation2 + $0x59] sm:$0xff] }
 0x127   : > { %v6926_v49 = vpack.c.bf16 %v1951_v48, %v1950_v47  ;;  %v1954_v36 = vld [vmem:[#allocation2 + $0x71] sm:$0xff] }
 0x128   : > { %v1952_v50 = vld [vmem:[#allocation2 + $0x61] sm:$0xff]  ;;  %v1953_v51 = vld [vmem:[#allocation2 + $0x69] sm:$0xff] }
 0x129   : > { %5721 = vmatmul.mubr.msk.bf16.gmra.mrb[40].mxu1 %vm774_vm3, %v6926_v49  ;;  %v6930_v52 = vpack.c.bf16 %v1953_v51, %v1952_v50 }
 0x12b   : > { %5724 = vmatprep.mubr.msk.bf16.mxu1 %vm774_vm3, %v6930_v52 }
 0x15f   : > { %v5642_v53 = vpop.f32.mrb[16].mxu1  ;;  %v5696_v54 = vpop.f32.mrb[16].mxu0 }
 0x160   : > { %v1307_v55 = vadd.f32 %v5642_v53, %v6866_v20  ;;  %v1869_v56 = vadd.f32 %v5696_v54, %v6866_v20  ;;  %v1219_v57 = vpop.f32.mrb[17].mxu1  ;;  %v1781_v58 = vpop.f32.mrb[17].mxu0 }
 0x161   : > { %v1305_v59 = vadd.f32 %v6866_v20, %v1219_v57  ;;  %v1867_v60 = vadd.f32 %v6866_v20, %v1781_v58  ;;  %v5643_v61 = vpop.f32.mrb[18].mxu1  ;;  %v5697_v62 = vpop.f32.mrb[18].mxu0 }
 0x162   : > { %v1323_v63 = vmax.f32 %v1307_v55, 0.0  ;;  %v1885_v0 = vmax.f32 %v1869_v56, 0.0  ;;  %v1308_v1 = vadd.f32 %v5643_v61, %v6866_v20  ;;  %v1870_v2 = vadd.f32 %v5697_v62, %v6866_v20  ;;  %v1222_v3 = vpop.f32.mrb[19].mxu1  ;;  %v1784_v4 = vpop.f32.mrb[19].mxu0  ;;  %v1918_v61 = vld [vmem:[#allocation2 + $0x18] sm:$0xff] }
 0x163   : > { %v1321_v5 = vmax.f32 %v1305_v59, 0.0  ;;  %v1883_v6 = vmax.f32 %v1867_v60, 0.0  ;;  %v1306_v7 = vadd.f32 %v6866_v20, %v1222_v3  ;;  %v1868_v8 = vadd.f32 %v6866_v20, %v1784_v4 }
 0x164   : > { %1339 = vst.msk [vmem:[#allocation2 + $0x90] sm:$0xff] %vm774_vm3, %v1323_v63  ;;  %1901 = vst.msk [vmem:[#allocation2 + $0x110] sm:$0xff] %vm774_vm3, %v1885_v0  ;;  %v1324_v9 = vmax.f32 %v1308_v1, 0.0  ;;  %v1886_v10 = vmax.f32 %v1870_v2, 0.0  ;;  %v1920_v0 = vld [vmem:[#allocation2 + $0x28] sm:$0xff]  ;;  %v1917_v2 = vld [vmem:[#allocation2 + $0x10] sm:$0xff] }
 0x165   : > { %1337 = vst.msk [vmem:[#allocation2 + $0x80] sm:$0xff] %vm774_vm3, %v1321_v5  ;;  %1899 = vst.msk [vmem:[#allocation2 + $0x100] sm:$0xff] %vm774_vm3, %v1883_v6  ;;  %v1322_v11 = vmax.f32 %v1306_v7, 0.0  ;;  %v1884_v12 = vmax.f32 %v1868_v8, 0.0  ;;  %v3615_v5 = vsel %vm1990_vm2, %v6859_v15, 0  ;;  %v6977_v7 = vpack.c.bf16 %v1918_v61, %v1917_v2 }
 0x166   : > { %1340 = vst.msk [vmem:[#allocation2 + $0x98] sm:$0xff] %vm774_vm3, %v1324_v9  ;;  %1902 = vst.msk [vmem:[#allocation2 + $0x118] sm:$0xff] %vm774_vm3, %v1886_v10  ;;  %v1919_v9 = vld [vmem:[#allocation2 + $0x20] sm:$0xff] }
 0x167   : > { %1338 = vst.msk [vmem:[#allocation2 + $0x88] sm:$0xff] %vm774_vm3, %v1322_v11  ;;  %1900 = vst.msk [vmem:[#allocation2 + $0x108] sm:$0xff] %vm774_vm3, %v1884_v12  ;;  %v5646_v14 = vpop.f32.mrb[20].mxu1  ;;  %v5700_v16 = vpop.f32.mrb[20].mxu0  ;;  %v6982_v10 = vpack.c.bf16 %v1920_v0, %v1919_v9  ;;  %v1929_v9 = vld [vmem:[#allocation2 + $0x70] sm:$0xff] }
 0x168   : > { %v1311_v18 = vadd.f32 %v5646_v14, %v6866_v20  ;;  %v1235_v19 = vpop.f32.mrb[21].mxu1  ;;  %v1797_v21 = vpop.f32.mrb[21].mxu0  ;;  %v2266_v14 = vsel %vm1990_vm2, %v6899_v25, 0  ;;  %v7001_v25 = vld [vmem:[%s7528_s3 + $0xc] sm:$0xf] }
 0x169   : > { %v1309_v22 = vadd.f32 %v6866_v20, %v1235_v19  ;;  %v1871_v23 = vadd.f32 %v6866_v20, %v1797_v21  ;;  %v5647_v24 = vpop.f32.mrb[22].mxu1  ;;  %v5701_v26 = vpop.f32.mrb[22].mxu0  ;;  %v6996_v19 = vld [vmem:[%s7528_s3 + $0x8] sm:$0xf] }
 0x16a   : > { %v1327_v27 = vmax.f32 %v1311_v18, 0.0  ;;  %v1312_v28 = vadd.f32 %v5647_v24, %v6866_v20  ;;  %v1238_v29 = vpop.f32.mrb[23].mxu1  ;;  %v1800_v30 = vpop.f32.mrb[23].mxu0 }
 0x16b   : > { %v1325_v31 = vmax.f32 %v1309_v22, 0.0  ;;  %v1887_v32 = vmax.f32 %v1871_v23, 0.0  ;;  %v1310_v33 = vadd.f32 %v6866_v20, %v1238_v29 }
 0x16c   : > { %1343 = vst.msk [vmem:[#allocation2 + $0xb0] sm:$0xff] %vm774_vm3, %v1327_v27  ;;  %v1328_v35 = vmax.f32 %v1312_v28, 0.0  ;;  %v1955_v37 = vld [vmem:[#allocation2 + $0x79] sm:$0xff] }
 0x16d   : > { %1341 = vst.msk [vmem:[#allocation2 + $0xa0] sm:$0xff] %vm774_vm3, %v1325_v31  ;;  %1903 = vst.msk [vmem:[#allocation2 + $0x120] sm:$0xff] %vm774_vm3, %v1887_v32  ;;  %v1326_v38 = vmax.f32 %v1310_v33, 0.0  ;;  %v6958_v39 = vpack.c.bf16 %v1955_v37, %v1954_v36  ;;  %v3443_v3 = vld [vmem:[#allocation2 + $0x91] sm:$0xff] }
 0x16e   : > { %1344 = vst.msk [vmem:[#allocation2 + $0xb8] sm:$0xff] %vm774_vm3, %v1328_v35  ;;  %v3441_v42 = vld [vmem:[#allocation2 + $0x81] sm:$0xff]  ;;  %v3442_v44 = vld [vmem:[#allocation2 + $0x89] sm:$0xff]  ;;  %v1922_v32 = vld [vmem:[#allocation2 + $0x38] sm:$0xff] }
 0x16f   : > { %1342 = vst.msk [vmem:[#allocation2 + $0xa8] sm:$0xff] %vm774_vm3, %v1326_v38  ;;  %v5650_v45 = vpop.f32.mrb[24].mxu1  ;;  %v5704_v47 = vpop.f32.mrb[24].mxu0  ;;  %5725 = vmatmul.mubr.msk.bf16.gmra.mrb[44].mxu1 %vm774_vm3, %v6958_v39  ;;  %v6964_v48 = vpack.c.bf16 %v3442_v44, %v3441_v42  ;;  %v1924_v35 = vld [vmem:[#allocation2 + $0x48] sm:$0xff]  ;;  %v1921_v37 = vld [vmem:[#allocation2 + $0x30] sm:$0xff] }
 0x170   : > { %v1315_v50 = vadd.f32 %v5650_v45, %v6866_v20  ;;  %v1251_v51 = vpop.f32.mrb[25].mxu1  ;;  %v1813_v53 = vpop.f32.mrb[25].mxu0  ;;  %5730 = vmatprep.mubr.msk.bf16.mxu1 %vm774_vm3, %v1931_v41  ;;  %v7017_v42 = vpack.c.bf16 %v1922_v32, %v1921_v37  ;;  %v1923_v45 = vld [vmem:[#allocation2 + $0x40] sm:$0xff] }
 0x171   : > { %v1313_v54 = vadd.f32 %v6866_v20, %v1251_v51  ;;  %v5651_v55 = vpop.f32.mrb[26].mxu1  ;;  %v5705_v56 = vpop.f32.mrb[26].mxu0  ;;  %5874 = vmatprep.mubr.msk.bf16.mxu0 %vm774_vm3, %v6964_v48  ;;  %v7022_v47 = vpack.c.bf16 %v1924_v35, %v1923_v45  ;;  %v1926_v53 = vld [vmem:[#allocation2 + $0x58] sm:$0xff] }
 0x172   : > { %v1331_v57 = vmax.f32 %v1315_v50, 0.0  ;;  %v1316_v58 = vadd.f32 %v5651_v55, %v6866_v20  ;;  %v1254_v59 = vpop.f32.mrb[27].mxu1  ;;  %v1816_v60 = vpop.f32.mrb[27].mxu0  ;;  %v1925_v55 = vld [vmem:[#allocation2 + $0x50] sm:$0xff] }
 0x173   : > { %v1329_v62 = vmax.f32 %v1313_v54, 0.0  ;;  %v1314_v63 = vadd.f32 %v6866_v20, %v1254_v59  ;;  %v1928_v54 = vld [vmem:[#allocation2 + $0x68] sm:$0xff]  ;;  %v1927_v60 = vld [vmem:[#allocation2 + $0x60] sm:$0xff]  ;;  %v2221_v45 = vld [vmem:[#allocation2 + $0x32] sm:$0xff] }
 0x174   : > { %1347 = vst.msk [vmem:[#allocation2 + $0xd0] sm:$0xff] %vm774_vm3, %v1331_v57  ;;  %v1332_v1 = vmax.f32 %v1316_v58, 0.0  ;;  %v3444_v4 = vld [vmem:[#allocation2 + $0x99] sm:$0xff]  ;;  %v7035_v58 = vpack.c.bf16 %v1926_v53, %v1925_v55  ;;  %v7039_v61 = vpack.c.bf16 %v1928_v54, %v1927_v60 }
 0x175   : > { %1345 = vst.msk [vmem:[#allocation2 + $0xc0] sm:$0xff] %vm774_vm3, %v1329_v62  ;;  %v1330_v6 = vmax.f32 %v1314_v63, 0.0  ;;  %v6979_v8 = vpack.c.bf16 %v3444_v4, %v3443_v3  ;;  %v3447_v38 = vld [vmem:[#allocation2 + $0xb1] sm:$0xff]  ;;  %v2215_v4 = vld [vmem:[#allocation2 + $0x2] sm:$0xff] }
 0x176   : > { %1348 = vst.msk [vmem:[#allocation2 + $0xd8] sm:$0xff] %vm774_vm3, %v1332_v1  ;;  %v3445_v11 = vld [vmem:[#allocation2 + $0xa1] sm:$0xff]  ;;  %v3446_v12 = vld [vmem:[#allocation2 + $0xa9] sm:$0xff]  ;;  %v1930_v1 = vld [vmem:[#allocation2 + $0x78] sm:$0xff] }
 0x177   : > { %1346 = vst.msk [vmem:[#allocation2 + $0xc8] sm:$0xff] %vm774_vm3, %v1330_v6  ;;  %v5654_v15 = vpop.f32.mrb[28].mxu1  ;;  %v5708_v16 = vpop.f32.mrb[28].mxu0  ;;  %5731 = vmatmul.mubr.msk.bf16.vlgmr.msra.gmra.mrb[32].mxu1 %vm774_vm3, %v6977_v7  ;;  %5875 = vmatmul.mubr.msk.bf16.vlgmr.msra.gmra.mrb[32].mxu0 %vm774_vm3, %v6979_v8  ;;  %v6991_v18 = vpack.c.bf16 %v3446_v12, %v3445_v11  ;;  %v3417_v6 = vld [vmem:[#allocation2 + $0x88] sm:$0xff]  ;;  %v7051_v11 = vpack.c.bf16 %v1930_v1, %v1929_v9  ;;  %v3423_v37 = vld [vmem:[#allocation2 + $0xb8] sm:$0xff] }
 0x178   : > { %v1319_v21 = vadd.f32 %v5654_v15, %v6866_v20  ;;  %5891 = vmatpush3.bf16.msra.mxu0 %v3615_v5  ;;  %v1267_v22 = vpop.f32.mrb[29].mxu1  ;;  %v1829_v23 = vpop.f32.mrb[29].mxu0  ;;  %5734 = vmatprep.mubr.msk.bf16.mxu1 %vm774_vm3, %v6982_v10  ;;  %v2216_v5 = vld [vmem:[#allocation2 + $0xa] sm:$0xff] }
 0x179   : > { %v1317_v24 = vadd.f32 %v6866_v20, %v1267_v22  ;;  %v5655_v26 = vpop.f32.mrb[30].mxu1  ;;  %v5709_v27 = vpop.f32.mrb[30].mxu0  ;;  %5878 = vmatprep.mubr.msk.bf16.mxu0 %vm774_vm3, %v6991_v18  ;;  %5747 = vmatpush3.bf16.msra.mxu1 %v2266_v14  ;;  %v3416_v14 = vld [vmem:[#allocation2 + $0x80] sm:$0xff]  ;;  %v2231_v15 = vpack.c.bf16 %v2216_v5, %v2215_v4  ;;  %v3419_v22 = vld [vmem:[#allocation2 + $0x98] sm:$0xff] }
 0x17a   : > { %v1335_v28 = vmax.f32 %v1319_v21, 0.0  ;;  %v1320_v29 = vadd.f32 %v5655_v26, %v6866_v20  ;;  %v1270_v30 = vpop.f32.mrb[31].mxu1  ;;  %v1832_v31 = vpop.f32.mrb[31].mxu0  ;;  %6409 = vmatprep.subr.msk.bf16.mxu0 %vm1990_vm2, %v6996_v19  ;;  %6401 = vmatprep.subr.msk.bf16.mxu1 %vm1990_vm2, %v7001_v25  ;;  %v7055_v16 = vpack.c.bf16 %v3417_v6, %v3416_v14  ;;  %v2218_v21 = vld [vmem:[#allocation2 + $0x1a] sm:$0xff]  ;;  %v2219_v23 = vld [vmem:[#allocation2 + $0x22] sm:$0xff]  ;;  %v2217_v26 = vld [vmem:[#allocation2 + $0x12] sm:$0xff] }
 0x17b   : > { %v1333_v33 = vmax.f32 %v1317_v24, 0.0  ;;  %v1318_v34 = vadd.f32 %v6866_v20, %v1270_v30  ;;  %v2220_v24 = vld [vmem:[#allocation2 + $0x2a] sm:$0xff]  ;;  %v3764_v31 = vsel %vm1990_vm2, %v6996_v19, 0 }
 0x17c   : > { %1351 = vst.msk [vmem:[#allocation2 + $0xf0] sm:$0xff] %vm774_vm3, %v1335_v28  ;;  %v1336_v36 = vmax.f32 %v1320_v29, 0.0  ;;  %v3448_v40 = vld [vmem:[#allocation2 + $0xb9] sm:$0xff]  ;;  %v3418_v27 = vld [vmem:[#allocation2 + $0x90] sm:$0xff]  ;;  %v3421_v28 = vld [vmem:[#allocation2 + $0xa8] sm:$0xff]  ;;  %v7064_v29 = vpack.c.bf16 %v2218_v21, %v2217_v26  ;;  %v7070_v32 = vpack.c.bf16 %v2220_v24, %v2219_v23 }
 0x17d   : > { %1349 = vst.msk [vmem:[#allocation2 + $0xe0] sm:$0xff] %vm774_vm3, %v1333_v33  ;;  %v1334_v41 = vmax.f32 %v1318_v34, 0.0  ;;  %v7019_v44 = vpack.c.bf16 %v3448_v40, %v3447_v38  ;;  %v3451_v56 = vld [vmem:[#allocation2 + $0xd1] sm:$0xff]  ;;  %v7066_v30 = vpack.c.bf16 %v3419_v22, %v3418_v27  ;;  %v3420_v33 = vld [vmem:[#allocation2 + $0xa0] sm:$0xff]  ;;  %v2432_v34 = vsel %vm1990_vm2, %v7001_v25, 0 }
 0x17e   : > { %1352 = vst.msk [vmem:[#allocation2 + $0xf8] sm:$0xff] %vm774_vm3, %v1336_v36  ;;  %v3449_v20 = vld [vmem:[#allocation2 + $0xc1] sm:$0xff]  ;;  %v3450_v50 = vld [vmem:[#allocation2 + $0xc9] sm:$0xff]  ;;  %v7078_v35 = vpack.c.bf16 %v3421_v28, %v3420_v33  ;;  %v3427_v60 = vld [vmem:[#allocation2 + $0xd8] sm:$0xff] }
 0x17f   : > { %1350 = vst.msk [vmem:[#allocation2 + $0xe8] sm:$0xff] %vm774_vm3, %v1334_v41  ;;  %5735 = vmatmul.mubr.msk.bf16.gmra.mrb[36].mxu1 %vm774_vm3, %v7017_v42  ;;  %5879 = vmatmul.mubr.msk.bf16.gmra.mrb[36].mxu0 %vm774_vm3, %v7019_v44  ;;  %v7029_v51 = vpack.c.bf16 %v3450_v50, %v3449_v20  ;;  %v5244_v36 = vld [vmem:[%s7528_s3 + $0xc] sm:$0xf]  ;;  %v5172_v19 = vld [vmem:[%s7528_s3 + $0x10] sm:$0xf]  ;;  %v2222_v25 = vld [vmem:[#allocation2 + $0x3a] sm:$0xff] }
 0x180   : > { %5738 = vmatprep.mubr.msk.bf16.mxu1 %vm774_vm3, %v7022_v47  ;;  %v2223_v38 = vld [vmem:[#allocation2 + $0x42] sm:$0xff]  ;;  %v2224_v40 = vld [vmem:[#allocation2 + $0x4a] sm:$0xff]  ;;  %v7092_v50 = vpack.c.bf16 %v2222_v25, %v2221_v45  ;;  %v2229_v24 = vld [vmem:[#allocation2 + $0x72] sm:$0xff] }
 0x181   : > { %5882 = vmatprep.mubr.msk.bf16.mxu0 %vm774_vm3, %v7029_v51  ;;  %v3425_v41 = vld [vmem:[#allocation2 + $0xc8] sm:$0xff]  ;;  %v3422_v20 = vld [vmem:[#allocation2 + $0xb0] sm:$0xff]  ;;  %v3424_v54 = vld [vmem:[#allocation2 + $0xc0] sm:$0xff]  ;;  %v7096_v55 = vpack.c.bf16 %v2224_v40, %v2223_v38  ;;  %v3929_v40 = vsel %vm1990_vm2, %v5244_v36, 0 }
 0x182   : > { %v7094_v53 = vpack.c.bf16 %v3423_v37, %v3422_v20  ;;  %v3714_v22 = vld [vmem:[#allocation2 + $0x82] sm:$0xff]  ;;  %v3715_v23 = vld [vmem:[#allocation2 + $0x8a] sm:$0xff]  ;;  %v3717_v33 = vld [vmem:[#allocation2 + $0x9a] sm:$0xff] }
 0x183   : > { %v3430_v26 = vld [vmem:[#allocation2 + $0xf0] sm:$0xff]  ;;  %v3718_v25 = vld [vmem:[#allocation2 + $0xa2] sm:$0xff] }
 0x184   : > { %v3452_v57 = vld [vmem:[#allocation2 + $0xd9] sm:$0xff]  ;;  %v3719_v37 = vld [vmem:[#allocation2 + $0xaa] sm:$0xff]  ;;  %v5181_v20 = vld [vmem:[%s7528_s3 + $0x14] sm:$0xf] }
 0x185   : > { %v7037_v59 = vpack.c.bf16 %v3452_v57, %v3451_v56  ;;  %v3455_v2 = vld [vmem:[#allocation2 + $0xf1] sm:$0xff]  ;;  %v3456_v3 = vld [vmem:[#allocation2 + $0xf9] sm:$0xff]  ;;  %v7098_v56 = vpack.c.bf16 %v3425_v41, %v3424_v54  ;;  %v2598_v41 = vsel %vm1990_vm2, %v5172_v19, 0 }
 0x186   : > { %v3453_v62 = vld [vmem:[#allocation2 + $0xe1] sm:$0xff]  ;;  %v3454_v63 = vld [vmem:[#allocation2 + $0xe9] sm:$0xff]  ;;  %v7053_v12 = vpack.c.bf16 %v3456_v3, %v3455_v2  ;;  %v2225_v2 = vld [vmem:[#allocation2 + $0x52] sm:$0xff] }
 0x187   : > { %5739 = vmatmul.mubr.msk.bf16.gmra.mrb[40].mxu1 %vm774_vm3, %v7035_v58  ;;  %5883 = vmatmul.mubr.msk.bf16.gmra.mrb[40].mxu0 %vm774_vm3, %v7037_v59  ;;  %v7045_v0 = vpack.c.bf16 %v3454_v63, %v3453_v62  ;;  %v2226_v57 = vld [vmem:[#allocation2 + $0x5a] sm:$0xff]  ;;  %v2227_v62 = vld [vmem:[#allocation2 + $0x62] sm:$0xff]  ;;  %v2228_v63 = vld [vmem:[#allocation2 + $0x6a] sm:$0xff] }
 0x188   : > { %5742 = vmatprep.mubr.msk.bf16.mxu1 %vm774_vm3, %v7039_v61  ;;  %v3429_v1 = vld [vmem:[#allocation2 + $0xe8] sm:$0xff]  ;;  %v3426_v3 = vld [vmem:[#allocation2 + $0xd0] sm:$0xff]  ;;  %v7108_v4 = vpack.c.bf16 %v2226_v57, %v2225_v2  ;;  %v3428_v6 = vld [vmem:[#allocation2 + $0xe0] sm:$0xff]  ;;  %v7112_v9 = vpack.c.bf16 %v2228_v63, %v2227_v62 }
 0x189   : > { %5886 = vmatprep.mubr.msk.bf16.mxu0 %vm774_vm3, %v7045_v0  ;;  %v7110_v5 = vpack.c.bf16 %v3427_v60, %v3426_v3  ;;  %v7114_v14 = vpack.c.bf16 %v3429_v1, %v3428_v6  ;;  %v3431_v21 = vld [vmem:[#allocation2 + $0xf8] sm:$0xff]  ;;  %v5253_v45 = vld [vmem:[%s7528_s3 + $0x10] sm:$0xf]  ;;  %v3726_v1 = vld [vmem:[#allocation2 + $0xe2] sm:$0xff] }
 0x18a   : > { %v7126_v28 = vpack.c.bf16 %v3431_v21, %v3430_v26  ;;  %v3723_v54 = vld [vmem:[#allocation2 + $0xca] sm:$0xff]  ;;  %v3720_v57 = vld [vmem:[#allocation2 + $0xb2] sm:$0xff]  ;;  %v3725_v63 = vld [vmem:[#allocation2 + $0xda] sm:$0xff]  ;;  %v2764_v26 = vsel %vm1990_vm2, %v5181_v20, 0 }
 0x18b   : > { %v3727_v2 = vld [vmem:[#allocation2 + $0xea] sm:$0xff]  ;;  %v3724_v3 = vld [vmem:[#allocation2 + $0xd2] sm:$0xff] }
 0x18c   : > { %v7172_v6 = vpack.c.bf16 %v3725_v63, %v3724_v3  ;;  %v3728_v21 = vld [vmem:[#allocation2 + $0xf2] sm:$0xff]  ;;  %v3054_v3 = vld [vmem:[#allocation2 + $0x69] sm:$0xff] }
 0x18f   : > { %5743 = vmatmul.mubr.msk.bf16.gmra.mrb[44].mxu1 %vm774_vm3, %v7051_v11  ;;  %5887 = vmatmul.mubr.msk.bf16.gmra.mrb[44].mxu0 %vm774_vm3, %v7053_v12 }
 0x190   : > { %5748 = vmatprep.mubr.msk.bf16.mxu1 %vm774_vm3, %v2231_v15  ;;  %5892 = vmatprep.mubr.msk.bf16.mxu0 %vm774_vm3, %v7055_v16  ;;  %v2230_v15 = vld [vmem:[#allocation2 + $0x7a] sm:$0xff] }
 0x191   : > { %v7124_v27 = vpack.c.bf16 %v2230_v15, %v2229_v24  ;;  %v7174_v15 = vpack.c.bf16 %v3727_v2, %v3726_v1  ;;  %v4094_v24 = vsel %vm1990_vm2, %v5253_v45, 0  ;;  %v3053_v2 = vld [vmem:[#allocation2 + $0x61] sm:$0xff] }
 0x197   : > { %5749 = vmatmul.mubr.msk.bf16.vlgmr.msra.gmra.mrb[32].mxu1 %vm774_vm3, %v7064_v29  ;;  %5893 = vmatmul.mubr.msk.bf16.vlgmr.msra.gmra.mrb[32].mxu0 %vm774_vm3, %v7066_v30 }
 0x198   : > { %5909 = vmatpush3.bf16.msra.mxu0 %v3764_v31  ;;  %5752 = vmatprep.mubr.msk.bf16.mxu1 %vm774_vm3, %v7070_v32  ;;  %v7128_v31 = vpack.c.bf16 %v3715_v23, %v3714_v22  ;;  %v3729_v22 = vld [vmem:[#allocation2 + $0xfa] sm:$0xff] }
 0x199   : > { %5896 = vmatprep.mubr.msk.bf16.mxu0 %vm774_vm3, %v7078_v35  ;;  %5765 = vmatpush3.bf16.msra.mxu1 %v2432_v34  ;;  %v3716_v34 = vld [vmem:[#allocation2 + $0x92] sm:$0xff]  ;;  %v7184_v23 = vpack.c.bf16 %v3729_v22, %v3728_v21 }
 0x19a   : > { %6410 = vmatprep.subr.msk.bf16.mxu0 %vm1990_vm2, %v5244_v36  ;;  %6402 = vmatprep.subr.msk.bf16.mxu1 %vm1990_vm2, %v5172_v19  ;;  %v7138_v38 = vpack.c.bf16 %v3717_v33, %v3716_v34  ;;  %v3721_v36 = vld [vmem:[#allocation2 + $0xba] sm:$0xff]  ;;  %v3722_v19 = vld [vmem:[#allocation2 + $0xc2] sm:$0xff]  ;;  %v5262_v33 = vld [vmem:[%s7528_s3 + $0x14] sm:$0xf] }
 0x19b   : > { %v7160_v60 = vpack.c.bf16 %v3721_v36, %v3720_v57  ;;  %v7162_v62 = vpack.c.bf16 %v3723_v54, %v3722_v19  ;;  %v4059_v34 = vld [vmem:[#allocation2 + $0x109] sm:$0xff]  ;;  %v3047_v19 = vld [vmem:[#allocation2 + $0x31] sm:$0xff] }
 0x19c   : > { %v3050_v36 = vld [vmem:[#allocation2 + $0x49] sm:$0xff]  ;;  %v3051_v21 = vld [vmem:[#allocation2 + $0x51] sm:$0xff] }
 0x19f   : > { %5753 = vmatmul.mubr.msk.bf16.gmra.mrb[36].mxu1 %vm774_vm3, %v7092_v50  ;;  %5897 = vmatmul.mubr.msk.bf16.gmra.mrb[36].mxu0 %vm774_vm3, %v7094_v53 }
 0x1a0   : > { %5756 = vmatprep.mubr.msk.bf16.mxu1 %vm774_vm3, %v7096_v55  ;;  %5900 = vmatprep.mubr.msk.bf16.mxu0 %vm774_vm3, %v7098_v56 }
 0x1a7   : > { %5757 = vmatmul.mubr.msk.bf16.gmra.mrb[40].mxu1 %vm774_vm3, %v7108_v4  ;;  %5901 = vmatmul.mubr.msk.bf16.gmra.mrb[40].mxu0 %vm774_vm3, %v7110_v5 }
 0x1a8   : > { %5760 = vmatprep.mubr.msk.bf16.mxu1 %vm774_vm3, %v7112_v9  ;;  %5904 = vmatprep.mubr.msk.bf16.mxu0 %vm774_vm3, %v7114_v14 }
 0x1af   : > { %5761 = vmatmul.mubr.msk.bf16.gmra.mrb[44].mxu1 %vm774_vm3, %v7124_v27  ;;  %5905 = vmatmul.mubr.msk.bf16.gmra.mrb[44].mxu0 %vm774_vm3, %v7126_v28 }
 0x1b0   : > { %5766 = vmatprep.mubr.msk.bf16.mxu1 %vm774_vm3, %v6977_v7  ;;  %5910 = vmatprep.mubr.msk.bf16.mxu0 %vm774_vm3, %v7128_v31  ;;  %v7146_v7 = vpack.c.bf16 %v3719_v37, %v3718_v25 }
 0x1b7   : > { %5767 = vmatmul.mubr.msk.bf16.vlgmr.msra.gmra.mrb[32].mxu1 %vm774_vm3, %v6982_v10  ;;  %5911 = vmatmul.mubr.msk.bf16.vlgmr.msra.gmra.mrb[32].mxu0 %vm774_vm3, %v7138_v38 }
 0x1b8   : > { %5927 = vmatpush3.bf16.msra.mxu0 %v3929_v40  ;;  %5770 = vmatprep.mubr.msk.bf16.mxu1 %vm774_vm3, %v7017_v42 }
 0x1b9   : > { %5914 = vmatprep.mubr.msk.bf16.mxu0 %vm774_vm3, %v7146_v7  ;;  %5783 = vmatpush3.bf16.msra.mxu1 %v2598_v41  ;;  %v5280_v41 = vld [vmem:[%s7528_s3 + $0x1c] sm:$0xf] }
 0x1ba   : > { %6411 = vmatprep.subr.msk.bf16.mxu0 %vm1990_vm2, %v5253_v45  ;;  %6403 = vmatprep.subr.msk.bf16.mxu1 %vm1990_vm2, %v5181_v20  ;;  %v3046_v45 = vld [vmem:[#allocation2 + $0x29] sm:$0xff]  ;;  %v4589_v57 = vsel %vm1990_vm2, %v5280_v41, 0 }
 0x1bf   : > { %5771 = vmatmul.mubr.msk.bf16.gmra.mrb[36].mxu1 %vm774_vm3, %v7022_v47  ;;  %5915 = vmatmul.mubr.msk.bf16.gmra.mrb[36].mxu0 %vm774_vm3, %v7160_v60 }
 0x1c0   : > { %5774 = vmatprep.mubr.msk.bf16.mxu1 %vm774_vm3, %v7035_v58  ;;  %5918 = vmatprep.mubr.msk.bf16.mxu0 %vm774_vm3, %v7162_v62 }
 0x1c7   : > { %5775 = vmatmul.mubr.msk.bf16.gmra.mrb[40].mxu1 %vm774_vm3, %v7039_v61  ;;  %5919 = vmatmul.mubr.msk.bf16.gmra.mrb[40].mxu0 %vm774_vm3, %v7172_v6 }
 0x1c8   : > { %5778 = vmatprep.mubr.msk.bf16.mxu1 %vm774_vm3, %v7051_v11  ;;  %5922 = vmatprep.mubr.msk.bf16.mxu0 %vm774_vm3, %v7174_v15 }
 0x1cf   : > { %5779 = vmatmul.mubr.msk.bf16.gmra.mrb[44].mxu1 %vm774_vm3, %v7055_v16  ;;  %5923 = vmatmul.mubr.msk.bf16.gmra.mrb[44].mxu0 %vm774_vm3, %v7184_v23 }
 0x1d0   : > { %5784 = vmatprep.mubr.msk.bf16.mxu1 %vm774_vm3, %v6891_v17  ;;  %5928 = vmatprep.mubr.msk.bf16.mxu0 %vm774_vm3, %v7066_v30  ;;  %v5190_v17 = vld [vmem:[%s7528_s3 + $0x18] sm:$0xf] }
 0x1d7   : > { %5785 = vmatmul.mubr.msk.bf16.vlgmr.msra.gmra.mrb[32].mxu1 %vm774_vm3, %v6904_v13  ;;  %5929 = vmatmul.mubr.msk.bf16.vlgmr.msra.gmra.mrb[32].mxu0 %vm774_vm3, %v7078_v35  ;;  %v3894_v13 = vld [vmem:[#allocation2 + $0x108] sm:$0xff] }
 0x1d8   : > { %5945 = vmatpush3.bf16.msra.mxu0 %v4094_v24  ;;  %5788 = vmatprep.mubr.msk.bf16.mxu1 %vm774_vm3, %v6916_v43  ;;  %v3893_v43 = vld [vmem:[#allocation2 + $0x100] sm:$0xff]  ;;  %v3065_v24 = vpack.c.bf16 %v3054_v3, %v3053_v2 }
 0x1d9   : > { %5932 = vmatprep.mubr.msk.bf16.mxu0 %vm774_vm3, %v7094_v53  ;;  %5801 = vmatpush3.bf16.msra.mxu1 %v2764_v26  ;;  %v3058_v26 = vld [vmem:[#allocation2 + $0x89] sm:$0xff] }
 0x1da   : > { %6412 = vmatprep.subr.msk.bf16.mxu0 %vm1990_vm2, %v5262_v33  ;;  %6404 = vmatprep.subr.msk.bf16.mxu1 %vm1990_vm2, %v5190_v17 }
 0x1df   : > { %5789 = vmatmul.mubr.msk.bf16.gmra.mrb[36].mxu1 %vm774_vm3, %v6922_v46  ;;  %5933 = vmatmul.mubr.msk.bf16.gmra.mrb[36].mxu0 %vm774_vm3, %v7098_v56  ;;  %v7228_v46 = vpack.c.bf16 %v3894_v13, %v3893_v43  ;;  %v4388_v43 = vld [vmem:[#allocation2 + $0x110] sm:$0xff] }
 0x1e0   : > { %5792 = vmatprep.mubr.msk.bf16.mxu1 %vm774_vm3, %v6926_v49  ;;  %5936 = vmatprep.mubr.msk.bf16.mxu0 %vm774_vm3, %v7110_v5  ;;  %v4259_v49 = vsel %vm1990_vm2, %v5262_v33, 0  ;;  %v3055_v33 = vld [vmem:[#allocation2 + $0x71] sm:$0xff] }
 0x1e7   : > { %5793 = vmatmul.mubr.msk.bf16.gmra.mrb[40].mxu1 %vm774_vm3, %v6930_v52  ;;  %5937 = vmatmul.mubr.msk.bf16.gmra.mrb[40].mxu0 %vm774_vm3, %v7114_v14  ;;  %v2930_v52 = vsel %vm1990_vm2, %v5190_v17, 0 }
 0x1e8   : > { %5796 = vmatprep.mubr.msk.bf16.mxu1 %vm774_vm3, %v6958_v39  ;;  %5940 = vmatprep.mubr.msk.bf16.mxu0 %vm774_vm3, %v7126_v28  ;;  %v5271_v39 = vld [vmem:[%s7528_s3 + $0x18] sm:$0xf] }
 0x1e9   : > { %v4424_v37 = vsel %vm1990_vm2, %v5271_v39, 0 }
 0x1ef   : > { %5797 = vmatmul.mubr.msk.bf16.gmra.mrb[44].mxu1 %vm774_vm3, %v6964_v48  ;;  %5941 = vmatmul.mubr.msk.bf16.gmra.mrb[44].mxu0 %vm774_vm3, %v7228_v46  ;;  %v5199_v48 = vld [vmem:[%s7528_s3 + $0x1c] sm:$0xf] }
 0x1f0   : > { %5802 = vmatprep.mubr.msk.bf16.mxu1 %vm774_vm3, %v7064_v29  ;;  %5946 = vmatprep.mubr.msk.bf16.mxu0 %vm774_vm3, %v6979_v8  ;;  %v4058_v29 = vld [vmem:[#allocation2 + $0x101] sm:$0xff]  ;;  %v3096_v40 = vsel %vm1990_vm2, %v5199_v48, 0 }
 0x1f1   : > { %v7272_v25 = vpack.c.bf16 %v4059_v34, %v4058_v29 }
 0x1f7   : > { %5803 = vmatmul.mubr.msk.bf16.vlgmr.msra.gmra.mrb[32].mxu1 %vm774_vm3, %v7070_v32  ;;  %5947 = vmatmul.mubr.msk.bf16.vlgmr.msra.gmra.mrb[32].mxu0 %vm774_vm3, %v6991_v18 }
 0x1f8   : > { %5963 = vmatpush3.bf16.msra.mxu0 %v4259_v49  ;;  %5806 = vmatprep.mubr.msk.bf16.mxu1 %vm774_vm3, %v7092_v50 }
 0x1f9   : > { %5950 = vmatprep.mubr.msk.bf16.mxu0 %vm774_vm3, %v7019_v44  ;;  %5819 = vmatpush3.bf16.msra.mxu1 %v2930_v52 }
 0x1fa   : > { %6413 = vmatprep.subr.msk.bf16.mxu0 %vm1990_vm2, %v5271_v39  ;;  %6405 = vmatprep.subr.msk.bf16.mxu1 %vm1990_vm2, %v5199_v48 }
 0x1ff   : > { %5807 = vmatmul.mubr.msk.bf16.gmra.mrb[36].mxu1 %vm774_vm3, %v7096_v55  ;;  %5951 = vmatmul.mubr.msk.bf16.gmra.mrb[36].mxu0 %vm774_vm3, %v7029_v51 }
 0x200   : > { %5810 = vmatprep.mubr.msk.bf16.mxu1 %vm774_vm3, %v7108_v4  ;;  %5954 = vmatprep.mubr.msk.bf16.mxu0 %vm774_vm3, %v7037_v59 }
 0x207   : > { %5811 = vmatmul.mubr.msk.bf16.gmra.mrb[40].mxu1 %vm774_vm3, %v7112_v9  ;;  %5955 = vmatmul.mubr.msk.bf16.gmra.mrb[40].mxu0 %vm774_vm3, %v7045_v0 }
 0x208   : > { %5814 = vmatprep.mubr.msk.bf16.mxu1 %vm774_vm3, %v7124_v27  ;;  %5958 = vmatprep.mubr.msk.bf16.mxu0 %vm774_vm3, %v7053_v12 }
 0x20f   : > { %5815 = vmatmul.mubr.msk.bf16.gmra.mrb[44].mxu1 %vm774_vm3, %v7128_v31  ;;  %5959 = vmatmul.mubr.msk.bf16.gmra.mrb[44].mxu0 %vm774_vm3, %v7272_v25 }
 0x210   : > { %5820 = vmatprep.mubr.msk.bf16.mxu1 %vm774_vm3, %v6982_v10  ;;  %5964 = vmatprep.mubr.msk.bf16.mxu0 %vm774_vm3, %v7138_v38  ;;  %v5208_v10 = vld [vmem:[%s7528_s3 + $0x20] sm:$0xf] }
 0x211   : > { %v3262_v1 = vsel %vm1990_vm2, %v5208_v10, 0 }
 0x217   : > { %5821 = vmatmul.mubr.msk.bf16.vlgmr.msra.gmra.mrb[32].mxu1 %vm774_vm3, %v7017_v42  ;;  %5965 = vmatmul.mubr.msk.bf16.vlgmr.msra.gmra.mrb[32].mxu0 %vm774_vm3, %v7146_v7  ;;  %v4223_v42 = vld [vmem:[#allocation2 + $0x102] sm:$0xff] }
 0x218   : > { %5981 = vmatpush3.bf16.msra.mxu0 %v4424_v37  ;;  %5824 = vmatprep.mubr.msk.bf16.mxu1 %vm774_vm3, %v7022_v47  ;;  %v4224_v47 = vld [vmem:[#allocation2 + $0x10a] sm:$0xff] }
 0x219   : > { %5968 = vmatprep.mubr.msk.bf16.mxu0 %vm774_vm3, %v7160_v60  ;;  %5837 = vmatpush3.bf16.msra.mxu1 %v3096_v40 }
 0x21a   : > { %6414 = vmatprep.subr.msk.bf16.mxu0 %vm1990_vm2, %v5280_v41  ;;  %6406 = vmatprep.subr.msk.bf16.mxu1 %vm1990_vm2, %v5208_v10 }
 0x21f   : > { %5825 = vmatmul.mubr.msk.bf16.gmra.mrb[36].mxu1 %vm774_vm3, %v7035_v58  ;;  %5969 = vmatmul.mubr.msk.bf16.gmra.mrb[36].mxu0 %vm774_vm3, %v7162_v62  ;;  %v3045_v58 = vld [vmem:[#allocation2 + $0x21] sm:$0xff] }
 0x220   : > { %5828 = vmatprep.mubr.msk.bf16.mxu1 %vm774_vm3, %v7039_v61  ;;  %5972 = vmatprep.mubr.msk.bf16.mxu0 %vm774_vm3, %v7172_v6  ;;  %v7316_v61 = vpack.c.bf16 %v4224_v47, %v4223_v42  ;;  %v3061_v20 = vpack.c.bf16 %v3046_v45, %v3045_v58 }
 0x227   : > { %5829 = vmatmul.mubr.msk.bf16.gmra.mrb[40].mxu1 %vm774_vm3, %v7051_v11  ;;  %5973 = vmatmul.mubr.msk.bf16.gmra.mrb[40].mxu0 %vm774_vm3, %v7174_v15  ;;  %v3048_v11 = vld [vmem:[#allocation2 + $0x39] sm:$0xff] }
 0x228   : > { %5832 = vmatprep.mubr.msk.bf16.mxu1 %vm774_vm3, %v7055_v16  ;;  %5976 = vmatprep.mubr.msk.bf16.mxu0 %vm774_vm3, %v7184_v23  ;;  %v3049_v16 = vld [vmem:[#allocation2 + $0x41] sm:$0xff]  ;;  %v3062_v54 = vpack.c.bf16 %v3048_v11, %v3047_v19 }
 0x229   : > { %v3063_v63 = vpack.c.bf16 %v3050_v36, %v3049_v16 }
 0x22f   : > { %5833 = vmatmul.mubr.msk.bf16.gmra.mrb[44].mxu1 %vm774_vm3, %v7066_v30  ;;  %5977 = vmatmul.mubr.msk.bf16.gmra.mrb[44].mxu0 %vm774_vm3, %v7316_v61  ;;  %v5289_v30 = vld [vmem:[%s7528_s3 + $0x20] sm:$0xf] }
 0x230   : > { %5838 = vmatprep.mubr.msk.bf16.mxu1 %vm774_vm3, %v3061_v20  ;;  %5982 = vmatprep.mubr.msk.bf16.mxu0 %vm774_vm3, %v7078_v35  ;;  %v3052_v35 = vld [vmem:[#allocation2 + $0x59] sm:$0xff] }
 0x231   : > { %v3064_v22 = vpack.c.bf16 %v3052_v35, %v3051_v21 }
 0x237   : > { %5839 = vmatmul.mubr.msk.bf16.vlgmr.msra.gmra.mrb[32].mxu1 %vm774_vm3, %v3062_v54  ;;  %5983 = vmatmul.mubr.msk.bf16.vlgmr.msra.gmra.mrb[32].mxu0 %vm774_vm3, %v7094_v53  ;;  %v3056_v53 = vld [vmem:[#allocation2 + $0x79] sm:$0xff] }
 0x238   : > { %5999 = vmatpush3.bf16.msra.mxu0 %v4589_v57  ;;  %5842 = vmatprep.mubr.msk.bf16.mxu1 %vm774_vm3, %v3063_v63  ;;  %v3066_v17 = vpack.c.bf16 %v3056_v53, %v3055_v33 }
 0x239   : > { %5986 = vmatprep.mubr.msk.bf16.mxu0 %vm774_vm3, %v7098_v56  ;;  %5855 = vmatpush3.bf16.msra.mxu1 %v3262_v1  ;;  %v3057_v56 = vld [vmem:[#allocation2 + $0x81] sm:$0xff] }
 0x23a   : > { %6415 = vmatprep.subr.msk.bf16.mxu0 %vm1990_vm2, %v5289_v30  ;;  %v3067_v13 = vpack.c.bf16 %v3058_v26, %v3057_v56 }
 0x23f   : > { %5843 = vmatmul.mubr.msk.bf16.gmra.mrb[36].mxu1 %vm774_vm3, %v3064_v22  ;;  %5987 = vmatmul.mubr.msk.bf16.gmra.mrb[36].mxu0 %vm774_vm3, %v7110_v5  ;;  %v4389_v5 = vld [vmem:[#allocation2 + $0x118] sm:$0xff] }
 0x240   : > { %5846 = vmatprep.mubr.msk.bf16.mxu1 %vm774_vm3, %v3065_v24  ;;  %5990 = vmatprep.mubr.msk.bf16.mxu0 %vm774_vm3, %v7114_v14  ;;  %v4397_v49 = vpack.c.bf16 %v4389_v5, %v4388_v43  ;;  %v4754_v14 = vsel %vm1990_vm2, %v5289_v30, 0 }
 0x247   : > { %5847 = vmatmul.mubr.msk.bf16.gmra.mrb[40].mxu1 %vm774_vm3, %v3066_v17  ;;  %5991 = vmatmul.mubr.msk.bf16.gmra.mrb[40].mxu0 %vm774_vm3, %v7126_v28 }
 0x248   : > { %5850 = vmatprep.mubr.msk.bf16.mxu1 %vm774_vm3, %v3067_v13  ;;  %5994 = vmatprep.mubr.msk.bf16.mxu0 %vm774_vm3, %v7228_v46 }
 0x24f   : > { %5851 = vmatmul.mubr.msk.bf16.gmra.mrb[44].mxu1 %vm774_vm3, %v6979_v8  ;;  %5995 = vmatmul.mubr.msk.bf16.gmra.mrb[44].mxu0 %vm774_vm3, %v4397_v49  ;;  %v4554_v8 = vld [vmem:[#allocation2 + $0x119] sm:$0xff] }
 0x250   : > { %5856 = vmatprep.mubr.msk.bf16.mxu1 %vm774_vm3, %v7070_v32  ;;  %6000 = vmatprep.mubr.msk.bf16.mxu0 %vm774_vm3, %v6991_v18  ;;  %v4553_v18 = vld [vmem:[#allocation2 + $0x111] sm:$0xff] }
 0x257   : > { %5857 = vmatmul.mubr.msk.bf16.vlgmr.msra.gmra.mrb[32].mxu1 %vm774_vm3, %v7092_v50  ;;  %6001 = vmatmul.mubr.msk.bf16.vlgmr.msra.gmra.mrb[32].mxu0 %vm774_vm3, %v7019_v44  ;;  %v4562_v44 = vpack.c.bf16 %v4554_v8, %v4553_v18 }
 0x258   : > { %6017 = vmatpush3.bf16.msra.mxu0 %v4754_v14  ;;  %5860 = vmatprep.mubr.msk.bf16.mxu1 %vm774_vm3, %v7096_v55 }
 0x259   : > { %6004 = vmatprep.mubr.msk.bf16.mxu0 %vm774_vm3, %v7029_v51  ;;  %v4719_v51 = vld [vmem:[#allocation2 + $0x11a] sm:$0xff] }
 0x25f   : > { %5861 = vmatmul.mubr.msk.bf16.gmra.mrb[36].mxu1 %vm774_vm3, %v7108_v4  ;;  %6005 = vmatmul.mubr.msk.bf16.gmra.mrb[36].mxu0 %vm774_vm3, %v7037_v59  ;;  %v4718_v59 = vld [vmem:[#allocation2 + $0x112] sm:$0xff] }
 0x260   : > { %5864 = vmatprep.mubr.msk.bf16.mxu1 %vm774_vm3, %v7112_v9  ;;  %6008 = vmatprep.mubr.msk.bf16.mxu0 %vm774_vm3, %v7045_v0  ;;  %v4727_v0 = vpack.c.bf16 %v4719_v51, %v4718_v59 }
 0x267   : > { %5865 = vmatmul.mubr.msk.bf16.gmra.mrb[40].mxu1 %vm774_vm3, %v7124_v27  ;;  %6009 = vmatmul.mubr.msk.bf16.gmra.mrb[40].mxu0 %vm774_vm3, %v7053_v12  ;;  %v7405_v12 = vld [vmem:[%s7529_s4] ss:$0 sm:$0xff] }
 0x268   : > { %5868 = vmatprep.mubr.msk.bf16.mxu1 %vm774_vm3, %v7128_v31  ;;  %6012 = vmatprep.mubr.msk.bf16.mxu0 %vm774_vm3, %v7272_v25 }
 0x26f   : > { %5869 = vmatmul.mubr.msk.bf16.gmra.mrb[44].mxu1 %vm774_vm3, %v7138_v38  ;;  %6013 = vmatmul.mubr.msk.bf16.gmra.mrb[44].mxu0 %vm774_vm3, %v4562_v44 }
 0x270   : > { %6018 = vmatprep.mubr.msk.bf16.mxu0 %vm774_vm3, %v7146_v7 }
 0x277   : > { %6019 = vmatmul.mubr.msk.bf16.vlgmr.msra.gmra.mrb[32].mxu0 %vm774_vm3, %v7160_v60 }
 0x278   : > { %6022 = vmatprep.mubr.msk.bf16.mxu0 %vm774_vm3, %v7162_v62 }
 0x27f   : > { %6023 = vmatmul.mubr.msk.bf16.gmra.mrb[36].mxu0 %vm774_vm3, %v7172_v6 }
 0x280   : > { %6026 = vmatprep.mubr.msk.bf16.mxu0 %vm774_vm3, %v7174_v15 }
 0x287   : > { %6027 = vmatmul.mubr.msk.bf16.gmra.mrb[40].mxu0 %vm774_vm3, %v7184_v23 }
 0x288   : > { %6030 = vmatprep.mubr.msk.bf16.mxu0 %vm774_vm3, %v7316_v61 }
 0x28f   : > { %6031 = vmatmul.mubr.msk.bf16.gmra.mrb[44].mxu0 %vm774_vm3, %v4727_v0 }
 0x32a   : > { %v5858_v32 = vpop.f32.mrb[32].mxu1 }
 0x32b   : > { %v3386_v50 = vadd.f32 %v5858_v32, %v7405_v12  ;;  %v3298_v55 = vpop.f32.mrb[33].mxu1 }
 0x32c   : > { %v3384_v4 = vadd.f32 %v7405_v12, %v3298_v55  ;;  %v5859_v9 = vpop.f32.mrb[34].mxu1 }
 0x32d   : > { %3402 = vst [vmem:[%s7409_s6 + $0x10] sm:$0xff] %v3386_v50  ;;  %v3387_v27 = vadd.f32 %v5859_v9, %v7405_v12  ;;  %v3301_v28 = vpop.f32.mrb[35].mxu1 }
 0x32e   : > { %3400 = vst [vmem:[%s7409_s6] sm:$0xff] %v3384_v4  ;;  %v3385_v31 = vadd.f32 %v7405_v12, %v3301_v28 }
 0x32f   : > { %3403 = vst [vmem:[%s7409_s6 + $0x18] sm:$0xff] %v3387_v27 }
 0x330   : > { %3401 = vst [vmem:[%s7409_s6 + $0x8] sm:$0xff] %v3385_v31 }
 0x332   : > { %v5862_v38 = vpop.f32.mrb[36].mxu1 }
 0x333   : > { %v3390_v7 = vadd.f32 %v5862_v38, %v7405_v12  ;;  %v3314_v60 = vpop.f32.mrb[37].mxu1 }
 0x334   : > { %v3388_v62 = vadd.f32 %v7405_v12, %v3314_v60  ;;  %v5863_v6 = vpop.f32.mrb[38].mxu1 }
 0x335   : > { %3406 = vst [vmem:[%s7409_s6 + $0x30] sm:$0xff] %v3390_v7  ;;  %v3391_v15 = vadd.f32 %v5863_v6, %v7405_v12  ;;  %v3317_v23 = vpop.f32.mrb[39].mxu1 }
 0x336   : > { %3404 = vst [vmem:[%s7409_s6 + $0x20] sm:$0xff] %v3388_v62  ;;  %v3389_v46 = vadd.f32 %v7405_v12, %v3317_v23 }
 0x337   : > { %3407 = vst [vmem:[%s7409_s6 + $0x38] sm:$0xff] %v3391_v15 }
 0x338   : > { %3405 = vst [vmem:[%s7409_s6 + $0x28] sm:$0xff] %v3389_v46 }
 0x33a   : > { %v5866_v52 = vpop.f32.mrb[40].mxu1 }
 0x33b   : > { %v3394_v39 = vadd.f32 %v5866_v52, %v7405_v12  ;;  %v3330_v48 = vpop.f32.mrb[41].mxu1 }
 0x33c   : > { %v3392_v29 = vadd.f32 %v7405_v12, %v3330_v48  ;;  %v5867_v34 = vpop.f32.mrb[42].mxu1 }
 0x33d   : > { %3410 = vst [vmem:[%s7409_s6 + $0x50] sm:$0xff] %v3394_v39  ;;  %v3395_v25 = vadd.f32 %v5867_v34, %v7405_v12  ;;  %v3333_v37 = vpop.f32.mrb[43].mxu1 }
 0x33e   : > { %3408 = vst [vmem:[%s7409_s6 + $0x40] sm:$0xff] %v3392_v29  ;;  %v3393_v40 = vadd.f32 %v7405_v12, %v3333_v37 }
 0x33f   : > { %3411 = vst [vmem:[%s7409_s6 + $0x58] sm:$0xff] %v3395_v25 }
 0x340   : > { %3409 = vst [vmem:[%s7409_s6 + $0x48] sm:$0xff] %v3393_v40 }
 0x342   : > { %v5870_v41 = vpop.f32.mrb[44].mxu1 }
 0x343   : > { %v3398_v10 = vadd.f32 %v5870_v41, %v7405_v12  ;;  %v3346_v42 = vpop.f32.mrb[45].mxu1 }
 0x344   : > { %v3396_v47 = vadd.f32 %v7405_v12, %v3346_v42  ;;  %v5871_v58 = vpop.f32.mrb[46].mxu1 }
 0x345   : > { %3414 = vst [vmem:[%s7409_s6 + $0x70] sm:$0xff] %v3398_v10  ;;  %v3399_v45 = vadd.f32 %v5871_v58, %v7405_v12  ;;  %v3349_v61 = vpop.f32.mrb[47].mxu1 }
 0x346   : > { %3412 = vst [vmem:[%s7409_s6 + $0x60] sm:$0xff] %v3396_v47  ;;  %v3397_v20 = vadd.f32 %v7405_v12, %v3349_v61 }
 0x347   : > { %3415 = vst [vmem:[%s7409_s6 + $0x78] sm:$0xff] %v3399_v45 }
 0x348   : > { %3413 = vst [vmem:[%s7409_s6 + $0x68] sm:$0xff] %v3397_v20 }
 0x34a   : > { %v6020_v11 = vpop.f32.mrb[32].mxu0 }
 0x34b   : > { %v4878_v16 = vadd.f32 %v6020_v11, %v7405_v12  ;;  %v4790_v36 = vpop.f32.mrb[33].mxu0 }
 0x34c   : > { %v4876_v19 = vadd.f32 %v7405_v12, %v4790_v36  ;;  %v6021_v54 = vpop.f32.mrb[34].mxu0 }
 0x34d   : > { %4894 = vst [vmem:[%s7409_s6 + $0x90] sm:$0xff] %v4878_v16  ;;  %v4879_v57 = vadd.f32 %v6021_v54, %v7405_v12  ;;  %v4793_v63 = vpop.f32.mrb[35].mxu0 }
 0x34e   : > { %4892 = vst [vmem:[%s7409_s6 + $0x80] sm:$0xff] %v4876_v19  ;;  %v4877_v1 = vadd.f32 %v7405_v12, %v4793_v63 }
 0x34f   : > { %4895 = vst [vmem:[%s7409_s6 + $0x98] sm:$0xff] %v4879_v57 }
 0x350   : > { %4893 = vst [vmem:[%s7409_s6 + $0x88] sm:$0xff] %v4877_v1 }
 0x352   : > { %v6024_v30 = vpop.f32.mrb[36].mxu0 }
 0x353   : > { %v4882_v35 = vadd.f32 %v6024_v30, %v7405_v12  ;;  %v4806_v2 = vpop.f32.mrb[37].mxu0 }
 0x354   : > { %v4880_v3 = vadd.f32 %v7405_v12, %v4806_v2  ;;  %v6025_v21 = vpop.f32.mrb[38].mxu0 }
 0x355   : > { %4898 = vst [vmem:[%s7409_s6 + $0xb0] sm:$0xff] %v4882_v35  ;;  %v4883_v22 = vadd.f32 %v6025_v21, %v7405_v12  ;;  %v4809_v24 = vpop.f32.mrb[39].mxu0 }
 0x356   : > { %4896 = vst [vmem:[%s7409_s6 + $0xa0] sm:$0xff] %v4880_v3  ;;  %v4881_v53 = vadd.f32 %v7405_v12, %v4809_v24 }
 0x357   : > { %4899 = vst [vmem:[%s7409_s6 + $0xb8] sm:$0xff] %v4883_v22 }
 0x358   : > { %4897 = vst [vmem:[%s7409_s6 + $0xa8] sm:$0xff] %v4881_v53 }
 0x35a   : > { %v6028_v56 = vpop.f32.mrb[40].mxu0 }
 0x35b   : > { %v4886_v26 = vadd.f32 %v6028_v56, %v7405_v12  ;;  %v4822_v33 = vpop.f32.mrb[41].mxu0 }
 0x35c   : > { %v4884_v17 = vadd.f32 %v7405_v12, %v4822_v33  ;;  %v6029_v13 = vpop.f32.mrb[42].mxu0 }
 0x35d   : > { %4902 = vst [vmem:[%s7409_s6 + $0xd0] sm:$0xff] %v4886_v26  ;;  %v4887_v5 = vadd.f32 %v6029_v13, %v7405_v12  ;;  %v4825_v43 = vpop.f32.mrb[43].mxu0 }
 0x35e   : > { %4900 = vst [vmem:[%s7409_s6 + $0xc0] sm:$0xff] %v4884_v17  ;;  %v4885_v49 = vadd.f32 %v7405_v12, %v4825_v43 }
 0x35f   : > { %4903 = vst [vmem:[%s7409_s6 + $0xd8] sm:$0xff] %v4887_v5 }
 0x360   : > { %4901 = vst [vmem:[%s7409_s6 + $0xc8] sm:$0xff] %v4885_v49 }
 0x362   : > { %v6032_v14 = vpop.f32.mrb[44].mxu0 }
 0x363   : > { %v4890_v8 = vadd.f32 %v6032_v14, %v7405_v12  ;;  %v4838_v18 = vpop.f32.mrb[45].mxu0 }
 0x364   : > { %v4888_v44 = vadd.f32 %v7405_v12, %v4838_v18  ;;  %v6033_v51 = vpop.f32.mrb[46].mxu0 }
 0x365   : > { %4906 = vst [vmem:[%s7409_s6 + $0xf0] sm:$0xff] %v4890_v8  ;;  %v4891_v59 = vadd.f32 %v6033_v51, %v7405_v12  ;;  %v4841_v0 = vpop.f32.mrb[47].mxu0 }
 0x366   : > { %4904 = vst [vmem:[%s7409_s6 + $0xe0] sm:$0xff] %v4888_v44  ;;  %v4889_v32 = vadd.f32 %v7405_v12, %v4841_v0 }
 0x367   : > { %4907 = vst [vmem:[%s7409_s6 + $0xf8] sm:$0xff] %v4891_v59 }
 0x368   : > { %4905 = vst [vmem:[%s7409_s6 + $0xe8] sm:$0xff] %v4889_v32 }
 0x369   : > { %6531 = shalt.err (!%p6528_p3)
}
 0x36a   : > { %s6532_s17 = scalar_lea.hbm %s7474_s11, 4096  ;;  %s6536_s25 = scalar_lea.hbm %s7530_s5, 8192 }
 0x36b   : > { %p6533_p4 = scmp.ne.s32.totalorder %s7474_s11, %s6532_s17  ;;  %p6537_p9 = scmp.lt.u32.totalorder %s7474_s11, %s7530_s5 }
 0x36c   : > { %p6538_p10 = scmp.lt.u32.totalorder %s6536_s25, %s6532_s17  ;;  %p6540_p12 = scmp.lt.u32.totalorder %s6532_s17, %s7474_s11 }
 0x36d   : > { %p6534_p7 = pnand %p6533_p4, %p6653_p5 }
 0x36e   : > { %p6539_p11 = por %p6538_p10, %p6537_p9 }
 0x36f   : > { %p6535_p8 = pneg %p6534_p7 }
 0x370   : > { %p6541_p13 = por %p6540_p12, %p6539_p11 }
 0x372   : > { %p6542_p0 = pnand %p6541_p13, %p6535_p8 }
 0x374   : > { %6545 = shalt.err (!%p6542_p0)
}
 0x375   : > { %s6583_s6 = smov 128   ;;  %s6584_s7 = smov 8  }
 0x376   : > { %6417 = dma.vmem_to_hbm [thread:$0]  (%p6653_p5), %s7476_s8, 4096, %s7474_s11, %s7484_s22, %s6583_s6, %s6583_s6, %s6584_s7  }
 0x377 PF: > { %p6423_p1 = scmp.ge.s32.totalorder %s6580_s21, 2  ;;  %s4937_s9 = sand.u32 1, %s6568_s18  }
 0x378   : > { %s4938_s10 = scalar_lea.sflag [#allocation4], %s4937_s9 }
 0x379   : > { %p6420_p2 = pnand %p6423_p1, %p6657_p6 }
 0x37b   : > { %6563 = dma.done.wait (!%p6420_p2), %s4938_s10, 4096  }
 0x37c   : > { %6565 = vsyncadd (!%p6420_p2), %s4938_s10, 4294963200  ;;  %p15_p3 = scmp.ge.s32.totalorder %s6640_s24, 4   ;;  %s7533_s18 = smov %s6572_s19 }
 0x37d   : > { %s7534_s19 = smov %s6576_s20  ;;  %s7535_s20 = smov %s6651_s27 }
 0x37e   : > { %s7536_s21 = smov %s6640_s24  ;;  %17 = sbr.rel (!%p15_p3) target bundleno = 3 (0x3), region = 85 }
 0x385   :  { %4943 = vsyncpa [#allocation4], 1 }
 0x386   :  { %4945 = vsyncpa [#allocation4 + $0x1], 1 }

</bundles_post_ra>
